<compile_context>
chip_gen: v5e
topology: v5e:2x2
jax: 0.10.0
libtpu: 0.0.40
codegen_flags: <defaults>
</compile_context>

<pallas_src>
import math
import jax
import jax.numpy as jnp
from jax.experimental import pallas as pl
from jax.experimental.pallas import tpu as pltpu

# ----------------------------- config (small synthetic BERT) ----------------
VOCAB = 128       # vocab size
TYPE_VOCAB = 2    # token-type vocab
MAX_POS = 32      # max position embeddings
B = 2             # batch
S = 8             # sequence length (post "tokenization", padded)
H = 32            # hidden size
NH = 4            # attention heads
HD = H // NH      # head dim
I = 64            # FFN intermediate size
L = 2             # encoder layers
EPS = 1e-12       # BERT LayerNorm eps


# ----------------------------- in-kernel helpers -----------------------------
def _ln(x, g, b):
    mu = jnp.mean(x, axis=-1, keepdims=True)
    var = jnp.mean(jnp.square(x - mu), axis=-1, keepdims=True)
    return (x - mu) * jax.lax.rsqrt(var + EPS) * g + b


# ----------------------------- fused full-encoder kernel ---------------------
def bert_kernel(
    emb_ref, mask_ref, ge_ref, be_ref,
    wqkv_ref, bqkv_ref, wao_ref, bao_ref, g1_ref, b1_ref,
    wi_ref, bi_ref, wfo_ref, bfo_ref, g2_ref, b2_ref,
    out_ref,
    h_ref,
):
    # Grid axis = encoder layer (serial / "arbitrary").  The hidden state lives
    # in VMEM scratch for the whole forward; batch is folded onto sublanes, so
    # activations are (B*S, H).

    @pl.when(pl.program_id(0) == 0)
    def _embed_ln():
        h_ref[...] = _ln(emb_ref[...], ge_ref[...], be_ref[...])

    x = h_ref[...]                                    # (B*S, H) f32
    x_bf = x.astype(jnp.bfloat16)

    # Fused QKV projection: one (B*S,H) @ (H,3H) MXU pass (bf16 in, f32 acc).
    qkv = jnp.dot(x_bf, wqkv_ref[0],
                  preferred_element_type=jnp.float32) + bqkv_ref[0]
    q = qkv[:, 0:H] * (1.0 / math.sqrt(HD))           # scale folded into q once
    k = qkv[:, H:2 * H]
    v = qkv[:, 2 * H:3 * H]

    # Additive key mask, broadcast once per layer (hoisted out of head loop).
    mask_full = jnp.broadcast_to(mask_ref[...], (B, S, S))   # (B, S, S)

    # Multi-head attention: static head loop; score/context dots are batched
    # over B; per-head contexts stay in vregs and are concatenated (no scratch).
    ctx_parts = []
    for hh in range(NH):
        lo = hh * HD
        qh = q[:, lo:lo + HD].reshape(B, S, HD)
        kh = k[:, lo:lo + HD].reshape(B, S, HD)
        vh = v[:, lo:lo + HD].reshape(B, S, HD)
        s = jnp.einsum("bqd,bkd->bqk", qh, kh,
                       preferred_element_type=jnp.float32) + mask_full
        s = s - jnp.max(s, axis=-1, keepdims=True)
        p = jnp.exp(s)
        p = p * pl.reciprocal(jnp.sum(p, axis=-1, keepdims=True), approx=True)
        ch = jnp.einsum("bqk,bkd->bqd", p, vh,
                        preferred_element_type=jnp.float32)   # (B, S, HD)
        ctx_parts.append(ch.reshape(B * S, HD))
    ctx = jnp.concatenate(ctx_parts, axis=-1)         # (B*S, H)

    # Attention output projection + residual + LayerNorm.
    attn = jnp.dot(ctx.astype(jnp.bfloat16), wao_ref[0],
                   preferred_element_type=jnp.float32) + bao_ref[0]
    h1 = _ln(x + attn, g1_ref[0], b1_ref[0])

    # Feed-forward (GELU) + residual + LayerNorm.
    inter = jnp.dot(h1.astype(jnp.bfloat16), wi_ref[0],
                    preferred_element_type=jnp.float32) + bi_ref[0]
    # TODO(synk): HF BERT uses exact erf-based GELU; tanh approximation used here.
    inter = jax.nn.gelu(inter, approximate=True)
    ffn = jnp.dot(inter.astype(jnp.bfloat16), wfo_ref[0],
                  preferred_element_type=jnp.float32) + bfo_ref[0]
    out = _ln(h1 + ffn, g2_ref[0], b2_ref[0])

    h_ref[...] = out
    out_ref[...] = out.astype(out_ref.dtype)


def bert_encoder(emb2d, mask_add, params):
    """emb2d: (B*S, H) f32 summed embeddings (pre-LN); mask_add: (B,1,S) f32."""
    N, Hh = emb2d.shape
    weights = [
        params["wqkv"], params["bqkv"], params["wao"], params["bao"],
        params["g1"], params["be1"], params["wi"], params["bi"],
        params["wfo"], params["bfo"], params["g2"], params["be2"],
    ]

    fixed_specs = [
        pl.BlockSpec(emb2d.shape, lambda l: (0, 0)),             # embeddings
        pl.BlockSpec(mask_add.shape, lambda l: (0, 0, 0)),       # additive mask
        pl.BlockSpec(params["emb_ln_g"].shape, lambda l: (0, 0)),
        pl.BlockSpec(params["emb_ln_b"].shape, lambda l: (0, 0)),
    ]
    # Per-layer weights are stacked along a leading L axis; one layer per step.
    layer_specs = [pl.BlockSpec((1,) + w.shape[1:], lambda l: (l, 0, 0))
                   for w in weights]

    return pl.pallas_call(
        bert_kernel,
        out_shape=jax.ShapeDtypeStruct((N, Hh), jnp.float32),
        grid=(L,),
        in_specs=fixed_specs + layer_specs,
        out_specs=pl.BlockSpec((N, Hh), lambda l: (0, 0)),
        scratch_shapes=[pltpu.VMEM((N, Hh), jnp.float32)],        # resident hidden state
        compiler_params=pltpu.CompilerParams(
            dimension_semantics=("arbitrary",)),                  # layers are sequential
    )(emb2d, mask_add, params["emb_ln_g"], params["emb_ln_b"], *weights)


# ----------------------------- parameter init --------------------------------
def init_params(key):
    keys = iter(jax.random.split(key, 256))

    def nrm(shape):
        return 0.02 * jax.random.normal(next(keys), shape, jnp.float32)

    params = {
        "tok_emb": nrm((VOCAB, H)),
        "pos_emb": nrm((MAX_POS, H)),
        "type_emb": nrm((TYPE_VOCAB, H)),
        "emb_ln_g": jnp.ones((1, H), jnp.float32),
        "emb_ln_b": jnp.zeros((1, H), jnp.float32),
        # stacked per-layer weights; matmul weights in bf16 (halves weight DMA)
        "wqkv": jnp.stack([
            jnp.concatenate([nrm((H, H)), nrm((H, H)), nrm((H, H))], axis=1)
            for _ in range(L)
        ]).astype(jnp.bfloat16),                                   # (L, H, 3H)
        "bqkv": jnp.zeros((L, 1, 3 * H), jnp.float32),
        "wao": jnp.stack([nrm((H, H)) for _ in range(L)]).astype(jnp.bfloat16),
        "bao": jnp.zeros((L, 1, H), jnp.float32),
        "g1": jnp.ones((L, 1, H), jnp.float32),
        "be1": jnp.zeros((L, 1, H), jnp.float32),
        "wi": jnp.stack([nrm((H, I)) for _ in range(L)]).astype(jnp.bfloat16),
        "bi": jnp.zeros((L, 1, I), jnp.float32),
        "wfo": jnp.stack([nrm((I, H)) for _ in range(L)]).astype(jnp.bfloat16),
        "bfo": jnp.zeros((L, 1, H), jnp.float32),
        "g2": jnp.ones((L, 1, H), jnp.float32),
        "be2": jnp.zeros((L, 1, H), jnp.float32),
    }
    return params


# ----------------------------- full forward (glue + kernel) ------------------
def bert_forward(params, token_ids, attention_mask, token_type_ids):
    Bsz, Ss = token_ids.shape
    # Embedding lookup (gather) is glue in plain JAX.
    emb = (params["tok_emb"][token_ids]
           + params["pos_emb"][jnp.arange(Ss)][None]
           + params["type_emb"][token_type_ids])                  # (B, S, H)
    emb2d = emb.reshape(Bsz * Ss, H)

    # Additive attention mask (B, 1, S): 0 for real tokens, -1e9 for padding.
    mask_add = (1.0 - attention_mask.astype(jnp.float32))[:, None, :] * -1e9

    hidden = bert_encoder(emb2d, mask_add, params)                # (B*S, H)

    # sentence_embeddings = last_hidden_state[:, 0, :]  ([CLS] token)
    return hidden.reshape(Bsz, Ss, H)[:, 0, :]


# ----------------------------- main ------------------------------------------
if __name__ == "__main__":
    # TODO(synk): BertTokenizer string tokenization has no Pallas/JAX equivalent;
    # deterministic synthetic token ids stand in for tokenizer output.
    key = jax.random.PRNGKey(0)
    k_param, k_tok = jax.random.split(key)

    params = init_params(k_param)

    token_ids = jax.random.randint(k_tok, (B, S), 0, VOCAB, dtype=jnp.int32)
    # Second sequence has two padded positions (mimics padding=True).
    attention_mask = jnp.array(
        [[1] * S, [1] * (S - 2) + [0, 0]], dtype=jnp.int32)
    # Sentence-pair style token types (mimics pad_token.join(pair)).
    token_type_ids = jnp.array(
        [[0] * (S // 2) + [1] * (S // 2)] * B, dtype=jnp.int32)

    fwd = jax.jit(bert_forward)
    cls_emb = fwd(params, token_ids, attention_mask, token_type_ids)
    cls_emb = jax.block_until_ready(cls_emb)

    assert cls_emb.shape == (B, H)
    assert bool(jnp.all(jnp.isfinite(cls_emb)))
    print("KERNEL_OK")
</pallas_src>

<mosaic_0001>
module attributes {stable_mosaic.version = 11 : i64} {
  func.func @bert_kernel(%arg0: i32, %arg1: memref<16x32xf32, #tpu.memory_space<vmem>>, %arg2: memref<2x1x8xf32, #tpu.memory_space<vmem>>, %arg3: memref<1x32xf32, #tpu.memory_space<vmem>>, %arg4: memref<1x32xf32, #tpu.memory_space<vmem>>, %arg5: memref<1x32x96xbf16, #tpu.memory_space<vmem>>, %arg6: memref<1x1x96xf32, #tpu.memory_space<vmem>>, %arg7: memref<1x32x32xbf16, #tpu.memory_space<vmem>>, %arg8: memref<1x1x32xf32, #tpu.memory_space<vmem>>, %arg9: memref<1x1x32xf32, #tpu.memory_space<vmem>>, %arg10: memref<1x1x32xf32, #tpu.memory_space<vmem>>, %arg11: memref<1x32x64xbf16, #tpu.memory_space<vmem>>, %arg12: memref<1x1x64xf32, #tpu.memory_space<vmem>>, %arg13: memref<1x64x32xbf16, #tpu.memory_space<vmem>>, %arg14: memref<1x1x32xf32, #tpu.memory_space<vmem>>, %arg15: memref<1x1x32xf32, #tpu.memory_space<vmem>>, %arg16: memref<1x1x32xf32, #tpu.memory_space<vmem>>, %arg17: memref<16x32xf32, #tpu.memory_space<vmem>>, %arg18: memref<16x32xf32, #tpu.memory_space<vmem>>) attributes {dimension_semantics = [#tpu.dimension_semantics<arbitrary>], iteration_bounds = array<i64: 2>, scalar_prefetch = 0 : i64, scratch_operands = 1 : i64, tpu.core_type = #tpu.core_type<tc>, window_params = [{pipeline_mode = #tpu.pipeline_mode<synchronous>, transform_indices = @transform_0, window_bounds = array<i64: 16, 32>}, {pipeline_mode = #tpu.pipeline_mode<synchronous>, transform_indices = @transform_1, window_bounds = array<i64: 2, 1, 8>}, {pipeline_mode = #tpu.pipeline_mode<synchronous>, transform_indices = @transform_2, window_bounds = array<i64: 1, 32>}, {pipeline_mode = #tpu.pipeline_mode<synchronous>, transform_indices = @transform_3, window_bounds = array<i64: 1, 32>}, {transform_indices = @transform_4, window_bounds = array<i64: 1, 32, 96>}, {transform_indices = @transform_5, window_bounds = array<i64: 1, 1, 96>}, {transform_indices = @transform_6, window_bounds = array<i64: 1, 32, 32>}, {transform_indices = @transform_7, window_bounds = array<i64: 1, 1, 32>}, {transform_indices = @transform_8, window_bounds = array<i64: 1, 1, 32>}, {transform_indices = @transform_9, window_bounds = array<i64: 1, 1, 32>}, {transform_indices = @transform_10, window_bounds = array<i64: 1, 32, 64>}, {transform_indices = @transform_11, window_bounds = array<i64: 1, 1, 64>}, {transform_indices = @transform_12, window_bounds = array<i64: 1, 64, 32>}, {transform_indices = @transform_13, window_bounds = array<i64: 1, 1, 32>}, {transform_indices = @transform_14, window_bounds = array<i64: 1, 1, 32>}, {transform_indices = @transform_15, window_bounds = array<i64: 1, 1, 32>}, {pipeline_mode = #tpu.pipeline_mode<synchronous>, transform_indices = @transform_16, window_bounds = array<i64: 16, 32>}]} {
    %c0_i32 = arith.constant 0 : i32
    %0 = arith.cmpi eq, %arg0, %c0_i32 : i32
    %1 = arith.extui %0 : i1 to i32
    %c0_i32_0 = arith.constant 0 : i32
    %2 = arith.cmpi ne, %1, %c0_i32_0 : i32
    scf.if %2 {
      %c0_79 = arith.constant 0 : index
      %c0_80 = arith.constant 0 : index
      %194 = vector.load %arg1[%c0_79, %c0_80] : memref<16x32xf32, #tpu.memory_space<vmem>>, vector<16x32xf32>
      %c0_81 = arith.constant 0 : index
      %c0_82 = arith.constant 0 : index
      %195 = vector.load %arg3[%c0_81, %c0_82] : memref<1x32xf32, #tpu.memory_space<vmem>>, vector<1x32xf32>
      %c0_83 = arith.constant 0 : index
      %c0_84 = arith.constant 0 : index
      %196 = vector.load %arg4[%c0_83, %c0_84] : memref<1x32xf32, #tpu.memory_space<vmem>>, vector<1x32xf32>
      %cst_85 = arith.constant dense<0.000000e+00> : vector<16xf32>
      %197 = vector.multi_reduction <add>, %194, %cst_85 [1] : vector<16x32xf32> to vector<16xf32>
      %198 = vector.shape_cast %197 : vector<16xf32> to vector<16x1xf32>
      %cst_86 = arith.constant 3.200000e+01 : f32
      %199 = vector.broadcast %cst_86 : f32 to vector<16x1xf32>
      %200 = arith.divf %198, %199 : vector<16x1xf32>
      %201 = vector.broadcast %200 : vector<16x1xf32> to vector<16x32xf32>
      %202 = arith.subf %194, %201 : vector<16x32xf32>
      %203 = arith.mulf %202, %202 : vector<16x32xf32>
      %cst_87 = arith.constant dense<0.000000e+00> : vector<16xf32>
      %204 = vector.multi_reduction <add>, %203, %cst_87 [1] : vector<16x32xf32> to vector<16xf32>
      %205 = vector.shape_cast %204 : vector<16xf32> to vector<16x1xf32>
      %cst_88 = arith.constant 3.200000e+01 : f32
      %206 = vector.broadcast %cst_88 : f32 to vector<16x1xf32>
      %207 = arith.divf %205, %206 : vector<16x1xf32>
      %208 = vector.broadcast %200 : vector<16x1xf32> to vector<16x32xf32>
      %209 = arith.subf %194, %208 : vector<16x32xf32>
      %cst_89 = arith.constant 9.99999996E-13 : f32
      %210 = vector.broadcast %cst_89 : f32 to vector<16x1xf32>
      %211 = arith.addf %207, %210 : vector<16x1xf32>
      %212 = math.rsqrt %211 : vector<16x1xf32>
      %213 = vector.broadcast %212 : vector<16x1xf32> to vector<16x32xf32>
      %214 = arith.mulf %209, %213 : vector<16x32xf32>
      %215 = vector.broadcast %195 : vector<1x32xf32> to vector<16x32xf32>
      %216 = arith.mulf %214, %215 : vector<16x32xf32>
      %217 = vector.broadcast %196 : vector<1x32xf32> to vector<16x32xf32>
      %218 = arith.addf %216, %217 : vector<16x32xf32>
      %c0_90 = arith.constant 0 : index
      %c0_91 = arith.constant 0 : index
      %219 = vector.load %arg18[%c0_90, %c0_91] : memref<16x32xf32, #tpu.memory_space<vmem>>, vector<16x32xf32>
      tpu.vector_store %arg18[%c0_90, %c0_91], %218 {strides = array<i32>} : memref<16x32xf32, #tpu.memory_space<vmem>>, vector<16x32xf32>,
    } else {
    }
    %c0 = arith.constant 0 : index
    %c0_1 = arith.constant 0 : index
    %3 = vector.load %arg18[%c0, %c0_1] : memref<16x32xf32, #tpu.memory_space<vmem>>, vector<16x32xf32>
    %4 = arith.truncf %3 : vector<16x32xf32> to vector<16x32xbf16>
    %c0_2 = arith.constant 0 : index
    %c0_3 = arith.constant 0 : index
    %c0_4 = arith.constant 0 : index
    %5 = vector.load %arg5[%c0_2, %c0_3, %c0_4] : memref<1x32x96xbf16, #tpu.memory_space<vmem>>, vector<1x32x96xbf16>
    %6 = vector.shape_cast %5 : vector<1x32x96xbf16> to vector<32x96xbf16>
    %cst = arith.constant dense<0.000000e+00> : vector<16x96xf32>
    %7 = tpu.matmul %4, %6, %cst {dimension_numbers = #tpu.dot_dimension_numbers<[1], [0], [0], [1], [0, 0, 1, 1], [], []>} : vector<16x32xbf16>, vector<32x96xbf16>, vector<16x96xf32> -> vector<16x96xf32>
    %c0_5 = arith.constant 0 : index
    %c0_6 = arith.constant 0 : index
    %c0_7 = arith.constant 0 : index
    %8 = vector.load %arg6[%c0_5, %c0_6, %c0_7] : memref<1x1x96xf32, #tpu.memory_space<vmem>>, vector<1x1x96xf32>
    %9 = vector.shape_cast %8 : vector<1x1x96xf32> to vector<1x96xf32>
    %10 = vector.broadcast %9 : vector<1x96xf32> to vector<16x96xf32>
    %11 = arith.addf %7, %10 : vector<16x96xf32>
    %12 = vector.extract_strided_slice %11 {offsets = [0, 0], sizes = [16, 32], strides = [1, 1]} : vector<16x96xf32> to vector<16x32xf32>
    %cst_8 = arith.constant 0.353553385 : f32
    %13 = vector.broadcast %cst_8 : f32 to vector<16x32xf32>
    %14 = arith.mulf %12, %13 : vector<16x32xf32>
    %15 = vector.extract_strided_slice %11 {offsets = [0, 32], sizes = [16, 32], strides = [1, 1]} : vector<16x96xf32> to vector<16x32xf32>
    %16 = vector.extract_strided_slice %11 {offsets = [0, 64], sizes = [16, 32], strides = [1, 1]} : vector<16x96xf32> to vector<16x32xf32>
    %c0_9 = arith.constant 0 : index
    %c0_10 = arith.constant 0 : index
    %c0_11 = arith.constant 0 : index
    %17 = vector.load %arg2[%c0_9, %c0_10, %c0_11] : memref<2x1x8xf32, #tpu.memory_space<vmem>>, vector<2x1x8xf32>
    %18 = vector.shape_cast %17 : vector<2x1x8xf32> to vector<2x1x8xf32>
    %19 = vector.broadcast %18 : vector<2x1x8xf32> to vector<2x8x8xf32>
    %20 = vector.extract_strided_slice %14 {offsets = [0, 0], sizes = [16, 8], strides = [1, 1]} : vector<16x32xf32> to vector<16x8xf32>
    %21 = vector.shape_cast %20 : vector<16x8xf32> to vector<2x8x8xf32>
    %22 = vector.extract_strided_slice %15 {offsets = [0, 0], sizes = [16, 8], strides = [1, 1]} : vector<16x32xf32> to vector<16x8xf32>
    %23 = vector.shape_cast %22 : vector<16x8xf32> to vector<2x8x8xf32>
    %24 = vector.extract_strided_slice %16 {offsets = [0, 0], sizes = [16, 8], strides = [1, 1]} : vector<16x32xf32> to vector<16x8xf32>
    %25 = vector.shape_cast %24 : vector<16x8xf32> to vector<2x8x8xf32>
    "tpu.trace_start"() <{level = 10 : i32, message = "bqd,bkd->bqk"}> : () -> ()
    %cst_12 = arith.constant dense<0.000000e+00> : vector<2x8x8xf32>
    %26 = tpu.matmul %21, %23, %cst_12 {dimension_numbers = #tpu.dot_dimension_numbers<[2], [2], [1], [1], [0, 0, 0, 1, 1, 1], [0], [0]>} : vector<2x8x8xf32>, vector<2x8x8xf32>, vector<2x8x8xf32> -> vector<2x8x8xf32>
    "tpu.trace_stop"() : () -> ()
    %27 = arith.addf %26, %19 : vector<2x8x8xf32>
    %cst_13 = arith.constant dense<0xFF800000> : vector<2x8xf32>
    %28 = vector.multi_reduction <maximumf>, %27, %cst_13 [2] : vector<2x8x8xf32> to vector<2x8xf32>
    %29 = vector.shape_cast %28 : vector<2x8xf32> to vector<2x8x1xf32>
    %30 = vector.broadcast %29 : vector<2x8x1xf32> to vector<2x8x8xf32>
    %31 = arith.subf %27, %30 : vector<2x8x8xf32>
    %32 = math.exp %31 : vector<2x8x8xf32>
    %cst_14 = arith.constant dense<0.000000e+00> : vector<2x8xf32>
    %33 = vector.multi_reduction <add>, %32, %cst_14 [2] : vector<2x8x8xf32> to vector<2x8xf32>
    %34 = vector.shape_cast %33 : vector<2x8xf32> to vector<2x8x1xf32>
    %35 = tpu.reciprocal %34 {approx = true} : vector<2x8x1xf32> -> vector<2x8x1xf32>
    %36 = vector.broadcast %35 : vector<2x8x1xf32> to vector<2x8x8xf32>
    %37 = arith.mulf %32, %36 : vector<2x8x8xf32>
    "tpu.trace_start"() <{level = 10 : i32, message = "bqk,bkd->bqd"}> : () -> ()
    %cst_15 = arith.constant dense<0.000000e+00> : vector<2x8x8xf32>
    %38 = tpu.matmul %37, %25, %cst_15 {dimension_numbers = #tpu.dot_dimension_numbers<[2], [1], [1], [2], [0, 0, 0, 1, 1, 2], [0], [0]>} : vector<2x8x8xf32>, vector<2x8x8xf32>, vector<2x8x8xf32> -> vector<2x8x8xf32>
    "tpu.trace_stop"() : () -> ()
    %39 = vector.shape_cast %38 : vector<2x8x8xf32> to vector<16x8xf32>
    %40 = vector.extract_strided_slice %14 {offsets = [0, 8], sizes = [16, 8], strides = [1, 1]} : vector<16x32xf32> to vector<16x8xf32>
    %41 = vector.shape_cast %40 : vector<16x8xf32> to vector<2x8x8xf32>
    %42 = vector.extract_strided_slice %15 {offsets = [0, 8], sizes = [16, 8], strides = [1, 1]} : vector<16x32xf32> to vector<16x8xf32>
    %43 = vector.shape_cast %42 : vector<16x8xf32> to vector<2x8x8xf32>
    %44 = vector.extract_strided_slice %16 {offsets = [0, 8], sizes = [16, 8], strides = [1, 1]} : vector<16x32xf32> to vector<16x8xf32>
    %45 = vector.shape_cast %44 : vector<16x8xf32> to vector<2x8x8xf32>
    "tpu.trace_start"() <{level = 10 : i32, message = "bqd,bkd->bqk"}> : () -> ()
    %cst_16 = arith.constant dense<0.000000e+00> : vector<2x8x8xf32>
    %46 = tpu.matmul %41, %43, %cst_16 {dimension_numbers = #tpu.dot_dimension_numbers<[2], [2], [1], [1], [0, 0, 0, 1, 1, 1], [0], [0]>} : vector<2x8x8xf32>, vector<2x8x8xf32>, vector<2x8x8xf32> -> vector<2x8x8xf32>
    "tpu.trace_stop"() : () -> ()
    %47 = arith.addf %46, %19 : vector<2x8x8xf32>
    %cst_17 = arith.constant dense<0xFF800000> : vector<2x8xf32>
    %48 = vector.multi_reduction <maximumf>, %47, %cst_17 [2] : vector<2x8x8xf32> to vector<2x8xf32>
    %49 = vector.shape_cast %48 : vector<2x8xf32> to vector<2x8x1xf32>
    %50 = vector.broadcast %49 : vector<2x8x1xf32> to vector<2x8x8xf32>
    %51 = arith.subf %47, %50 : vector<2x8x8xf32>
    %52 = math.exp %51 : vector<2x8x8xf32>
    %cst_18 = arith.constant dense<0.000000e+00> : vector<2x8xf32>
    %53 = vector.multi_reduction <add>, %52, %cst_18 [2] : vector<2x8x8xf32> to vector<2x8xf32>
    %54 = vector.shape_cast %53 : vector<2x8xf32> to vector<2x8x1xf32>
    %55 = tpu.reciprocal %54 {approx = true} : vector<2x8x1xf32> -> vector<2x8x1xf32>
    %56 = vector.broadcast %55 : vector<2x8x1xf32> to vector<2x8x8xf32>
    %57 = arith.mulf %52, %56 : vector<2x8x8xf32>
    "tpu.trace_start"() <{level = 10 : i32, message = "bqk,bkd->bqd"}> : () -> ()
    %cst_19 = arith.constant dense<0.000000e+00> : vector<2x8x8xf32>
    %58 = tpu.matmul %57, %45, %cst_19 {dimension_numbers = #tpu.dot_dimension_numbers<[2], [1], [1], [2], [0, 0, 0, 1, 1, 2], [0], [0]>} : vector<2x8x8xf32>, vector<2x8x8xf32>, vector<2x8x8xf32> -> vector<2x8x8xf32>
    "tpu.trace_stop"() : () -> ()
    %59 = vector.shape_cast %58 : vector<2x8x8xf32> to vector<16x8xf32>
    %60 = vector.extract_strided_slice %14 {offsets = [0, 16], sizes = [16, 8], strides = [1, 1]} : vector<16x32xf32> to vector<16x8xf32>
    %61 = vector.shape_cast %60 : vector<16x8xf32> to vector<2x8x8xf32>
    %62 = vector.extract_strided_slice %15 {offsets = [0, 16], sizes = [16, 8], strides = [1, 1]} : vector<16x32xf32> to vector<16x8xf32>
    %63 = vector.shape_cast %62 : vector<16x8xf32> to vector<2x8x8xf32>
    %64 = vector.extract_strided_slice %16 {offsets = [0, 16], sizes = [16, 8], strides = [1, 1]} : vector<16x32xf32> to vector<16x8xf32>
    %65 = vector.shape_cast %64 : vector<16x8xf32> to vector<2x8x8xf32>
    "tpu.trace_start"() <{level = 10 : i32, message = "bqd,bkd->bqk"}> : () -> ()
    %cst_20 = arith.constant dense<0.000000e+00> : vector<2x8x8xf32>
    %66 = tpu.matmul %61, %63, %cst_20 {dimension_numbers = #tpu.dot_dimension_numbers<[2], [2], [1], [1], [0, 0, 0, 1, 1, 1], [0], [0]>} : vector<2x8x8xf32>, vector<2x8x8xf32>, vector<2x8x8xf32> -> vector<2x8x8xf32>
    "tpu.trace_stop"() : () -> ()
    %67 = arith.addf %66, %19 : vector<2x8x8xf32>
    %cst_21 = arith.constant dense<0xFF800000> : vector<2x8xf32>
    %68 = vector.multi_reduction <maximumf>, %67, %cst_21 [2] : vector<2x8x8xf32> to vector<2x8xf32>
    %69 = vector.shape_cast %68 : vector<2x8xf32> to vector<2x8x1xf32>
    %70 = vector.broadcast %69 : vector<2x8x1xf32> to vector<2x8x8xf32>
    %71 = arith.subf %67, %70 : vector<2x8x8xf32>
    %72 = math.exp %71 : vector<2x8x8xf32>
    %cst_22 = arith.constant dense<0.000000e+00> : vector<2x8xf32>
    %73 = vector.multi_reduction <add>, %72, %cst_22 [2] : vector<2x8x8xf32> to vector<2x8xf32>
    %74 = vector.shape_cast %73 : vector<2x8xf32> to vector<2x8x1xf32>
    %75 = tpu.reciprocal %74 {approx = true} : vector<2x8x1xf32> -> vector<2x8x1xf32>
    %76 = vector.broadcast %75 : vector<2x8x1xf32> to vector<2x8x8xf32>
    %77 = arith.mulf %72, %76 : vector<2x8x8xf32>
    "tpu.trace_start"() <{level = 10 : i32, message = "bqk,bkd->bqd"}> : () -> ()
    %cst_23 = arith.constant dense<0.000000e+00> : vector<2x8x8xf32>
    %78 = tpu.matmul %77, %65, %cst_23 {dimension_numbers = #tpu.dot_dimension_numbers<[2], [1], [1], [2], [0, 0, 0, 1, 1, 2], [0], [0]>} : vector<2x8x8xf32>, vector<2x8x8xf32>, vector<2x8x8xf32> -> vector<2x8x8xf32>
    "tpu.trace_stop"() : () -> ()
    %79 = vector.shape_cast %78 : vector<2x8x8xf32> to vector<16x8xf32>
    %80 = vector.extract_strided_slice %14 {offsets = [0, 24], sizes = [16, 8], strides = [1, 1]} : vector<16x32xf32> to vector<16x8xf32>
    %81 = vector.shape_cast %80 : vector<16x8xf32> to vector<2x8x8xf32>
    %82 = vector.extract_strided_slice %15 {offsets = [0, 24], sizes = [16, 8], strides = [1, 1]} : vector<16x32xf32> to vector<16x8xf32>
    %83 = vector.shape_cast %82 : vector<16x8xf32> to vector<2x8x8xf32>
    %84 = vector.extract_strided_slice %16 {offsets = [0, 24], sizes = [16, 8], strides = [1, 1]} : vector<16x32xf32> to vector<16x8xf32>
    %85 = vector.shape_cast %84 : vector<16x8xf32> to vector<2x8x8xf32>
    "tpu.trace_start"() <{level = 10 : i32, message = "bqd,bkd->bqk"}> : () -> ()
    %cst_24 = arith.constant dense<0.000000e+00> : vector<2x8x8xf32>
    %86 = tpu.matmul %81, %83, %cst_24 {dimension_numbers = #tpu.dot_dimension_numbers<[2], [2], [1], [1], [0, 0, 0, 1, 1, 1], [0], [0]>} : vector<2x8x8xf32>, vector<2x8x8xf32>, vector<2x8x8xf32> -> vector<2x8x8xf32>
    "tpu.trace_stop"() : () -> ()
    %87 = arith.addf %86, %19 : vector<2x8x8xf32>
    %cst_25 = arith.constant dense<0xFF800000> : vector<2x8xf32>
    %88 = vector.multi_reduction <maximumf>, %87, %cst_25 [2] : vector<2x8x8xf32> to vector<2x8xf32>
    %89 = vector.shape_cast %88 : vector<2x8xf32> to vector<2x8x1xf32>
    %90 = vector.broadcast %89 : vector<2x8x1xf32> to vector<2x8x8xf32>
    %91 = arith.subf %87, %90 : vector<2x8x8xf32>
    %92 = math.exp %91 : vector<2x8x8xf32>
    %cst_26 = arith.constant dense<0.000000e+00> : vector<2x8xf32>
    %93 = vector.multi_reduction <add>, %92, %cst_26 [2] : vector<2x8x8xf32> to vector<2x8xf32>
    %94 = vector.shape_cast %93 : vector<2x8xf32> to vector<2x8x1xf32>
    %95 = tpu.reciprocal %94 {approx = true} : vector<2x8x1xf32> -> vector<2x8x1xf32>
    %96 = vector.broadcast %95 : vector<2x8x1xf32> to vector<2x8x8xf32>
    %97 = arith.mulf %92, %96 : vector<2x8x8xf32>
    "tpu.trace_start"() <{level = 10 : i32, message = "bqk,bkd->bqd"}> : () -> ()
    %cst_27 = arith.constant dense<0.000000e+00> : vector<2x8x8xf32>
    %98 = tpu.matmul %97, %85, %cst_27 {dimension_numbers = #tpu.dot_dimension_numbers<[2], [1], [1], [2], [0, 0, 0, 1, 1, 2], [0], [0]>} : vector<2x8x8xf32>, vector<2x8x8xf32>, vector<2x8x8xf32> -> vector<2x8x8xf32>
    "tpu.trace_stop"() : () -> ()
    %99 = vector.shape_cast %98 : vector<2x8x8xf32> to vector<16x8xf32>
    %100 = tpu.concatenate %39, %59, %79, %99 in 1 : vector<16x8xf32>, vector<16x8xf32>, vector<16x8xf32>, vector<16x8xf32> -> vector<16x32xf32>
    %101 = arith.truncf %100 : vector<16x32xf32> to vector<16x32xbf16>
    %c0_28 = arith.constant 0 : index
    %c0_29 = arith.constant 0 : index
    %c0_30 = arith.constant 0 : index
    %102 = vector.load %arg7[%c0_28, %c0_29, %c0_30] : memref<1x32x32xbf16, #tpu.memory_space<vmem>>, vector<1x32x32xbf16>
    %103 = vector.shape_cast %102 : vector<1x32x32xbf16> to vector<32x32xbf16>
    %cst_31 = arith.constant dense<0.000000e+00> : vector<16x32xf32>
    %104 = tpu.matmul %101, %103, %cst_31 {dimension_numbers = #tpu.dot_dimension_numbers<[1], [0], [0], [1], [0, 0, 1, 1], [], []>} : vector<16x32xbf16>, vector<32x32xbf16>, vector<16x32xf32> -> vector<16x32xf32>
    %c0_32 = arith.constant 0 : index
    %c0_33 = arith.constant 0 : index
    %c0_34 = arith.constant 0 : index
    %105 = vector.load %arg8[%c0_32, %c0_33, %c0_34] : memref<1x1x32xf32, #tpu.memory_space<vmem>>, vector<1x1x32xf32>
    %106 = vector.shape_cast %105 : vector<1x1x32xf32> to vector<1x32xf32>
    %107 = vector.broadcast %106 : vector<1x32xf32> to vector<16x32xf32>
    %108 = arith.addf %104, %107 : vector<16x32xf32>
    %109 = arith.addf %3, %108 : vector<16x32xf32>
    %c0_35 = arith.constant 0 : index
    %c0_36 = arith.constant 0 : index
    %c0_37 = arith.constant 0 : index
    %110 = vector.load %arg9[%c0_35, %c0_36, %c0_37] : memref<1x1x32xf32, #tpu.memory_space<vmem>>, vector<1x1x32xf32>
    %111 = vector.shape_cast %110 : vector<1x1x32xf32> to vector<1x32xf32>
    %c0_38 = arith.constant 0 : index
    %c0_39 = arith.constant 0 : index
    %c0_40 = arith.constant 0 : index
    %112 = vector.load %arg10[%c0_38, %c0_39, %c0_40] : memref<1x1x32xf32, #tpu.memory_space<vmem>>, vector<1x1x32xf32>
    %113 = vector.shape_cast %112 : vector<1x1x32xf32> to vector<1x32xf32>
    %cst_41 = arith.constant dense<0.000000e+00> : vector<16xf32>
    %114 = vector.multi_reduction <add>, %109, %cst_41 [1] : vector<16x32xf32> to vector<16xf32>
    %115 = vector.shape_cast %114 : vector<16xf32> to vector<16x1xf32>
    %cst_42 = arith.constant 3.200000e+01 : f32
    %116 = vector.broadcast %cst_42 : f32 to vector<16x1xf32>
    %117 = arith.divf %115, %116 : vector<16x1xf32>
    %118 = vector.broadcast %117 : vector<16x1xf32> to vector<16x32xf32>
    %119 = arith.subf %109, %118 : vector<16x32xf32>
    %120 = arith.mulf %119, %119 : vector<16x32xf32>
    %cst_43 = arith.constant dense<0.000000e+00> : vector<16xf32>
    %121 = vector.multi_reduction <add>, %120, %cst_43 [1] : vector<16x32xf32> to vector<16xf32>
    %122 = vector.shape_cast %121 : vector<16xf32> to vector<16x1xf32>
    %cst_44 = arith.constant 3.200000e+01 : f32
    %123 = vector.broadcast %cst_44 : f32 to vector<16x1xf32>
    %124 = arith.divf %122, %123 : vector<16x1xf32>
    %125 = vector.broadcast %117 : vector<16x1xf32> to vector<16x32xf32>
    %126 = arith.subf %109, %125 : vector<16x32xf32>
    %cst_45 = arith.constant 9.99999996E-13 : f32
    %127 = vector.broadcast %cst_45 : f32 to vector<16x1xf32>
    %128 = arith.addf %124, %127 : vector<16x1xf32>
    %129 = math.rsqrt %128 : vector<16x1xf32>
    %130 = vector.broadcast %129 : vector<16x1xf32> to vector<16x32xf32>
    %131 = arith.mulf %126, %130 : vector<16x32xf32>
    %132 = vector.broadcast %111 : vector<1x32xf32> to vector<16x32xf32>
    %133 = arith.mulf %131, %132 : vector<16x32xf32>
    %134 = vector.broadcast %113 : vector<1x32xf32> to vector<16x32xf32>
    %135 = arith.addf %133, %134 : vector<16x32xf32>
    %136 = arith.truncf %135 : vector<16x32xf32> to vector<16x32xbf16>
    %c0_46 = arith.constant 0 : index
    %c0_47 = arith.constant 0 : index
    %c0_48 = arith.constant 0 : index
    %137 = vector.load %arg11[%c0_46, %c0_47, %c0_48] : memref<1x32x64xbf16, #tpu.memory_space<vmem>>, vector<1x32x64xbf16>
    %138 = vector.shape_cast %137 : vector<1x32x64xbf16> to vector<32x64xbf16>
    %cst_49 = arith.constant dense<0.000000e+00> : vector<16x64xf32>
    %139 = tpu.matmul %136, %138, %cst_49 {dimension_numbers = #tpu.dot_dimension_numbers<[1], [0], [0], [1], [0, 0, 1, 1], [], []>} : vector<16x32xbf16>, vector<32x64xbf16>, vector<16x64xf32> -> vector<16x64xf32>
    %c0_50 = arith.constant 0 : index
    %c0_51 = arith.constant 0 : index
    %c0_52 = arith.constant 0 : index
    %140 = vector.load %arg12[%c0_50, %c0_51, %c0_52] : memref<1x1x64xf32, #tpu.memory_space<vmem>>, vector<1x1x64xf32>
    %141 = vector.shape_cast %140 : vector<1x1x64xf32> to vector<1x64xf32>
    %142 = vector.broadcast %141 : vector<1x64xf32> to vector<16x64xf32>
    %143 = arith.addf %139, %142 : vector<16x64xf32>
    %144 = arith.mulf %143, %143 : vector<16x64xf32>
    %145 = arith.mulf %143, %144 : vector<16x64xf32>
    %cst_53 = arith.constant 4.471500e-02 : f32
    %146 = vector.broadcast %cst_53 : f32 to vector<16x64xf32>
    %147 = arith.mulf %146, %145 : vector<16x64xf32>
    %148 = arith.addf %143, %147 : vector<16x64xf32>
    %cst_54 = arith.constant 0.797884583 : f32
    %149 = vector.broadcast %cst_54 : f32 to vector<16x64xf32>
    %150 = arith.mulf %149, %148 : vector<16x64xf32>
    %151 = math.tanh %150 : vector<16x64xf32>
    %cst_55 = arith.constant 1.000000e+00 : f32
    %152 = vector.broadcast %cst_55 : f32 to vector<16x64xf32>
    %153 = arith.addf %152, %151 : vector<16x64xf32>
    %cst_56 = arith.constant 5.000000e-01 : f32
    %154 = vector.broadcast %cst_56 : f32 to vector<16x64xf32>
    %155 = arith.mulf %154, %153 : vector<16x64xf32>
    %156 = arith.mulf %143, %155 : vector<16x64xf32>
    %157 = arith.truncf %156 : vector<16x64xf32> to vector<16x64xbf16>
    %c0_57 = arith.constant 0 : index
    %c0_58 = arith.constant 0 : index
    %c0_59 = arith.constant 0 : index
    %158 = vector.load %arg13[%c0_57, %c0_58, %c0_59] : memref<1x64x32xbf16, #tpu.memory_space<vmem>>, vector<1x64x32xbf16>
    %159 = vector.shape_cast %158 : vector<1x64x32xbf16> to vector<64x32xbf16>
    %cst_60 = arith.constant dense<0.000000e+00> : vector<16x32xf32>
    %160 = tpu.matmul %157, %159, %cst_60 {dimension_numbers = #tpu.dot_dimension_numbers<[1], [0], [0], [1], [0, 0, 1, 1], [], []>} : vector<16x64xbf16>, vector<64x32xbf16>, vector<16x32xf32> -> vector<16x32xf32>
    %c0_61 = arith.constant 0 : index
    %c0_62 = arith.constant 0 : index
    %c0_63 = arith.constant 0 : index
    %161 = vector.load %arg14[%c0_61, %c0_62, %c0_63] : memref<1x1x32xf32, #tpu.memory_space<vmem>>, vector<1x1x32xf32>
    %162 = vector.shape_cast %161 : vector<1x1x32xf32> to vector<1x32xf32>
    %163 = vector.broadcast %162 : vector<1x32xf32> to vector<16x32xf32>
    %164 = arith.addf %160, %163 : vector<16x32xf32>
    %165 = arith.addf %135, %164 : vector<16x32xf32>
    %c0_64 = arith.constant 0 : index
    %c0_65 = arith.constant 0 : index
    %c0_66 = arith.constant 0 : index
    %166 = vector.load %arg15[%c0_64, %c0_65, %c0_66] : memref<1x1x32xf32, #tpu.memory_space<vmem>>, vector<1x1x32xf32>
    %167 = vector.shape_cast %166 : vector<1x1x32xf32> to vector<1x32xf32>
    %c0_67 = arith.constant 0 : index
    %c0_68 = arith.constant 0 : index
    %c0_69 = arith.constant 0 : index
    %168 = vector.load %arg16[%c0_67, %c0_68, %c0_69] : memref<1x1x32xf32, #tpu.memory_space<vmem>>, vector<1x1x32xf32>
    %169 = vector.shape_cast %168 : vector<1x1x32xf32> to vector<1x32xf32>
    %cst_70 = arith.constant dense<0.000000e+00> : vector<16xf32>
    %170 = vector.multi_reduction <add>, %165, %cst_70 [1] : vector<16x32xf32> to vector<16xf32>
    %171 = vector.shape_cast %170 : vector<16xf32> to vector<16x1xf32>
    %cst_71 = arith.constant 3.200000e+01 : f32
    %172 = vector.broadcast %cst_71 : f32 to vector<16x1xf32>
    %173 = arith.divf %171, %172 : vector<16x1xf32>
    %174 = vector.broadcast %173 : vector<16x1xf32> to vector<16x32xf32>
    %175 = arith.subf %165, %174 : vector<16x32xf32>
    %176 = arith.mulf %175, %175 : vector<16x32xf32>
    %cst_72 = arith.constant dense<0.000000e+00> : vector<16xf32>
    %177 = vector.multi_reduction <add>, %176, %cst_72 [1] : vector<16x32xf32> to vector<16xf32>
    %178 = vector.shape_cast %177 : vector<16xf32> to vector<16x1xf32>
    %cst_73 = arith.constant 3.200000e+01 : f32
    %179 = vector.broadcast %cst_73 : f32 to vector<16x1xf32>
    %180 = arith.divf %178, %179 : vector<16x1xf32>
    %181 = vector.broadcast %173 : vector<16x1xf32> to vector<16x32xf32>
    %182 = arith.subf %165, %181 : vector<16x32xf32>
    %cst_74 = arith.constant 9.99999996E-13 : f32
    %183 = vector.broadcast %cst_74 : f32 to vector<16x1xf32>
    %184 = arith.addf %180, %183 : vector<16x1xf32>
    %185 = math.rsqrt %184 : vector<16x1xf32>
    %186 = vector.broadcast %185 : vector<16x1xf32> to vector<16x32xf32>
    %187 = arith.mulf %182, %186 : vector<16x32xf32>
    %188 = vector.broadcast %167 : vector<1x32xf32> to vector<16x32xf32>
    %189 = arith.mulf %187, %188 : vector<16x32xf32>
    %190 = vector.broadcast %169 : vector<1x32xf32> to vector<16x32xf32>
    %191 = arith.addf %189, %190 : vector<16x32xf32>
    %c0_75 = arith.constant 0 : index
    %c0_76 = arith.constant 0 : index
    %192 = vector.load %arg18[%c0_75, %c0_76] : memref<16x32xf32, #tpu.memory_space<vmem>>, vector<16x32xf32>
    tpu.vector_store %arg18[%c0_75, %c0_76], %191 {strides = array<i32>} : memref<16x32xf32, #tpu.memory_space<vmem>>, vector<16x32xf32>,
    %c0_77 = arith.constant 0 : index
    %c0_78 = arith.constant 0 : index
    %193 = vector.load %arg17[%c0_77, %c0_78] : memref<16x32xf32, #tpu.memory_space<vmem>>, vector<16x32xf32>
    tpu.vector_store %arg17[%c0_77, %c0_78], %191 {strides = array<i32>} : memref<16x32xf32, #tpu.memory_space<vmem>>, vector<16x32xf32>,
    return
  }
  func.func @transform_0(%arg0: i32) -> (i32, i32) {
    %c0_i32 = arith.constant 0 : i32
    %c0_i32_0 = arith.constant 0 : i32
    %c0_i32_1 = arith.constant 0 : i32
    return %c0_i32, %c0_i32_0 : i32, i32
  }
  func.func @transform_1(%arg0: i32) -> (i32, i32, i32) {
    %c0_i32 = arith.constant 0 : i32
    %c0_i32_0 = arith.constant 0 : i32
    %c0_i32_1 = arith.constant 0 : i32
    %c0_i32_2 = arith.constant 0 : i32
    return %c0_i32, %c0_i32_0, %c0_i32_1 : i32, i32, i32
  }
  func.func @transform_2(%arg0: i32) -> (i32, i32) {
    %c0_i32 = arith.constant 0 : i32
    %c0_i32_0 = arith.constant 0 : i32
    %c0_i32_1 = arith.constant 0 : i32
    return %c0_i32, %c0_i32_0 : i32, i32
  }
  func.func @transform_3(%arg0: i32) -> (i32, i32) {
    %c0_i32 = arith.constant 0 : i32
    %c0_i32_0 = arith.constant 0 : i32
    %c0_i32_1 = arith.constant 0 : i32
    return %c0_i32, %c0_i32_0 : i32, i32
  }
  func.func @transform_4(%arg0: i32) -> (i32, i32, i32) {
    %c0_i32 = arith.constant 0 : i32
    %c0_i32_0 = arith.constant 0 : i32
    %c0_i32_1 = arith.constant 0 : i32
    return %arg0, %c0_i32, %c0_i32_0 : i32, i32, i32
  }
  func.func @transform_5(%arg0: i32) -> (i32, i32, i32) {
    %c0_i32 = arith.constant 0 : i32
    %c0_i32_0 = arith.constant 0 : i32
    %c0_i32_1 = arith.constant 0 : i32
    return %arg0, %c0_i32, %c0_i32_0 : i32, i32, i32
  }
  func.func @transform_6(%arg0: i32) -> (i32, i32, i32) {
    %c0_i32 = arith.constant 0 : i32
    %c0_i32_0 = arith.constant 0 : i32
    %c0_i32_1 = arith.constant 0 : i32
    return %arg0, %c0_i32, %c0_i32_0 : i32, i32, i32
  }
  func.func @transform_7(%arg0: i32) -> (i32, i32, i32) {
    %c0_i32 = arith.constant 0 : i32
    %c0_i32_0 = arith.constant 0 : i32
    %c0_i32_1 = arith.constant 0 : i32
    return %arg0, %c0_i32, %c0_i32_0 : i32, i32, i32
  }
  func.func @transform_8(%arg0: i32) -> (i32, i32, i32) {
    %c0_i32 = arith.constant 0 : i32
    %c0_i32_0 = arith.constant 0 : i32
    %c0_i32_1 = arith.constant 0 : i32
    return %arg0, %c0_i32, %c0_i32_0 : i32, i32, i32
  }
  func.func @transform_9(%arg0: i32) -> (i32, i32, i32) {
    %c0_i32 = arith.constant 0 : i32
    %c0_i32_0 = arith.constant 0 : i32
    %c0_i32_1 = arith.constant 0 : i32
    return %arg0, %c0_i32, %c0_i32_0 : i32, i32, i32
  }
  func.func @transform_10(%arg0: i32) -> (i32, i32, i32) {
    %c0_i32 = arith.constant 0 : i32
    %c0_i32_0 = arith.constant 0 : i32
    %c0_i32_1 = arith.constant 0 : i32
    return %arg0, %c0_i32, %c0_i32_0 : i32, i32, i32
  }
  func.func @transform_11(%arg0: i32) -> (i32, i32, i32) {
    %c0_i32 = arith.constant 0 : i32
    %c0_i32_0 = arith.constant 0 : i32
    %c0_i32_1 = arith.constant 0 : i32
    return %arg0, %c0_i32, %c0_i32_0 : i32, i32, i32
  }
  func.func @transform_12(%arg0: i32) -> (i32, i32, i32) {
    %c0_i32 = arith.constant 0 : i32
    %c0_i32_0 = arith.constant 0 : i32
    %c0_i32_1 = arith.constant 0 : i32
    return %arg0, %c0_i32, %c0_i32_0 : i32, i32, i32
  }
  func.func @transform_13(%arg0: i32) -> (i32, i32, i32) {
    %c0_i32 = arith.constant 0 : i32
    %c0_i32_0 = arith.constant 0 : i32
    %c0_i32_1 = arith.constant 0 : i32
    return %arg0, %c0_i32, %c0_i32_0 : i32, i32, i32
  }
  func.func @transform_14(%arg0: i32) -> (i32, i32, i32) {
    %c0_i32 = arith.constant 0 : i32
    %c0_i32_0 = arith.constant 0 : i32
    %c0_i32_1 = arith.constant 0 : i32
    return %arg0, %c0_i32, %c0_i32_0 : i32, i32, i32
  }
  func.func @transform_15(%arg0: i32) -> (i32, i32, i32) {
    %c0_i32 = arith.constant 0 : i32
    %c0_i32_0 = arith.constant 0 : i32
    %c0_i32_1 = arith.constant 0 : i32
    return %arg0, %c0_i32, %c0_i32_0 : i32, i32, i32
  }
  func.func @transform_16(%arg0: i32) -> (i32, i32) {
    %c0_i32 = arith.constant 0 : i32
    %c0_i32_0 = arith.constant 0 : i32
    %c0_i32_1 = arith.constant 0 : i32
    return %c0_i32, %c0_i32_0 : i32, i32
  }
}

</mosaic_0001>

<bundles_post_ra>
// kernel: bert_forward.1
= control target key start
LH: loop header
LB: loop body
LE: loop exit
PB: predicated region body
PF: predicated region fallthrough
CT: control target
= control target key end

     0   :  { %s2087_s21 = smov 0   ;;  %s2352_s0 = inlined_call_operand.vmem [shape: f32[16,32], index: 0, kind: input, shape index: {}]   ;;  %s2353_s1 = inlined_call_operand.vmem [shape: f32[2,1,8], index: 1, kind: input, shape index: {}]   ;;  %s2354_s2 = inlined_call_operand.vmem [shape: f32[1,32], index: 2, kind: input, shape index: {}]   ;;  %s2355_s3 = inlined_call_operand.vmem [shape: f32[1,32], index: 3, kind: input, shape index: {}]   ;;  %s2356_s4 = inlined_call_operand.vmem [shape: bf16[2,32,96], index: 4, kind: input, shape index: {}]   ;;  %s2357_s5 = inlined_call_operand.vmem [shape: f32[2,1,96], index: 5, kind: input, shape index: {}]   ;;  %s2358_s6 = inlined_call_operand.vmem [shape: bf16[2,32,32], index: 6, kind: input, shape index: {}]   ;;  %s2359_s7 = inlined_call_operand.vmem [shape: f32[2,1,32], index: 7, kind: input, shape index: {}]   ;;  %s2360_s8 = inlined_call_operand.vmem [shape: f32[2,1,32], index: 8, kind: input, shape index: {}]   ;;  %s2361_s9 = inlined_call_operand.vmem [shape: f32[2,1,32], index: 9, kind: input, shape index: {}]   ;;  %s2362_s10 = inlined_call_operand.vmem [shape: bf16[2,32,64], index: 10, kind: input, shape index: {}]   ;;  %s2363_s11 = inlined_call_operand.vmem [shape: f32[2,1,64], index: 11, kind: input, shape index: {}]   ;;  %s2364_s12 = inlined_call_operand.vmem [shape: bf16[2,64,32], index: 12, kind: input, shape index: {}]   ;;  %s2365_s13 = inlined_call_operand.vmem [shape: f32[2,1,32], index: 13, kind: input, shape index: {}]   ;;  %s2366_s14 = inlined_call_operand.vmem [shape: f32[2,1,32], index: 14, kind: input, shape index: {}]   ;;  %s2367_s15 = inlined_call_operand.vmem [shape: f32[2,1,32], index: 15, kind: input, shape index: {}]   ;;  %s2368_s16 = inlined_call_operand.vmem [shape: f32[16,32], index: 16, kind: output, shape index: {}]  }
   0x1   :  { %2374 = sst [smem:[#allocation5_spill]] %s2352_s0 }
   0x2   :  { %2375 = sst [smem:[#allocation6_spill]] %s2353_s1 }
   0x3   :  { %2376 = sst [smem:[#allocation7_spill]] %s2355_s3 }
   0x4   :  { %2377 = sst [smem:[#allocation8_spill]] %s2356_s4 }
   0x5   :  { %2378 = sst [smem:[#allocation9_spill]] %s2358_s6 }
   0x6   :  { %2379 = sst [smem:[#allocation10_spill]] %s2368_s16 }
   0x7 LB: > { %2380 = sst [smem:[#allocation3_spill]] %s1984_s21  ;;  %s1768_s22 = sadd.s32 4294967295, %s1984_s21   ;;  %s1984_s21 = sphi %s2087_s21, %s26_s21  }
   0x8   : > { %p1771_p0 = scmp.ge.s32.totalorder %s1984_s21, 1  ;;  %p551_p1 = scmp.lt.s32.totalorder %s1984_s21, 3 }
   0xa   : > { %p552_p2 = pnand %p1771_p0, %p551_p1 }
   0xc   : > { %555 = sbr.rel (%p552_p2) target bundleno = 2598 (0xa26), region = 84 }
  0x11   : > { %p635_p3 = scmp.lt.s32.totalorder %s1768_s22, 1  ;;  %s2381_s4 = sld [smem:[#allocation8_spill]] }
  0x12   : > { %s2382_s6 = sld [smem:[#allocation9_spill]]  ;;  %p1780_p4 = scmp.ne.s32.totalorder %s1768_s22, 0 }
  0x13   : > { %s2095_s23 = scalar_select %p635_p3, %s1768_s22, 1 }
  0x14   : > { %s2385_s16 = sld [smem:[#allocation7_spill]] (!%p1780_p4) }
  0x15   : > { %s1851_s24 = sshll.u32 %s2095_s23, 4  ;;  %s672_s25 = scalar_lea.vmem %s2365_s13, %s2095_s23 }
  0x16   : > { %s675_s28 = scalar_lea.vmem %s2366_s14, %s2095_s23  ;;  %s678_s3 = scalar_lea.vmem %s2367_s15, %s2095_s23 }
  0x17   : > { %s2105_s30 = scalar_lea.vmem %s2381_s4, %s1851_s24  ;;  %s2127_s4 = scalar_lea.vmem %s2362_s10, %s1851_s24 }
  0x18   : > { %s2110_s18 = scalar_lea.vmem %s2382_s6, %s1851_s24  ;;  %683 = sbr.rel (%p1780_p4) target bundleno = 310 (0x136), region = 88 }
  0x19   : > { %2383 = sst [smem:[#allocation4_spill]] %s2110_s18  ;;  %s1854_s18 = sshll.u32 %s2095_s23, 5 }
  0x1a   : > { %s2137_s21 = scalar_lea.vmem %s2364_s12, %s1854_s18  ;;  %s2384_s6 = sld [smem:[#allocation5_spill]] (!%p1780_p4) }
  0x1d   : > { %vm688_vm0 = vcmask 261120   ;;  %v1986_v4 = vmov 32.0   ;;  %v1889_v35 = vld [vmem:[%s2354_s2] ss:$0 sm:$0xff] }
  0x1e   : > { %1891 = vrcp.f32 %v1986_v4  ;;  %v1890_v38 = vld [vmem:[%s2385_s16] ss:$0 sm:$0xff] }
  0x20   : > { %v684_v0 = vld [vmem:[%s2384_s6] sm:$0xff]  ;;  %v685_v2 = vld [vmem:[%s2384_s6 + $0x8] sm:$0xff] }
  0x21   : > { %v689_v1 = vsel %vm688_vm0, %v684_v0, 0.0  ;;  %v692_v3 = vsel %vm688_vm0, %v685_v2, 0.0 }
  0x22   : > { %690 = vadd.xlane.f32.xlu0 %v689_v1 }
  0x24   : > { %v1892_v5 = vpop.eup %1891 }
  0x25   : > { %v696_v6 = vmul.f32 32.0, %v1892_v5  ;;  %vm700_vm1 = vweird.f32 %v1892_v5 }
  0x27   : > { %v697_v7 = vsub.f32 1.0, %v696_v6 }
  0x29   : > { %v698_v8 = vmul.f32 %v1892_v5, %v697_v7 }
  0x2a   : > { %693 = vadd.xlane.f32.xlu0 %v692_v3 }
  0x2b   : > { %v699_v9 = vadd.f32 %v1892_v5, %v698_v8 }
  0x2d   : > { %v701_v10 = vsel %vm700_vm1, %v1892_v5, %v699_v9 }
  0x95   : > { %v691_v11 = vpop.xlane.xlu0 %690 }
  0x96   : > { %v702_v12 = vmul.f32 %v701_v10, %v691_v11 }
  0x98   : > { %v704_v13 = vsub.f32 %v684_v0, %v702_v12 }
  0x9a   : > { %v706_v14 = vmul.f32 %v704_v13, %v704_v13 }
  0x9c   : > { %v708_v15 = vsel %vm688_vm0, %v706_v14, 0.0 }
  0x9d   : > { %709 = vadd.xlane.f32.xlu1 %v708_v15  ;;  %v694_v16 = vpop.xlane.xlu0 %693 }
  0x9e   : > { %v703_v17 = vmul.f32 %v701_v10, %v694_v16 }
  0xa0   : > { %v705_v18 = vsub.f32 %v685_v2, %v703_v17 }
  0xa2   : > { %v707_v19 = vmul.f32 %v705_v18, %v705_v18 }
  0xa4   : > { %v711_v20 = vsel %vm688_vm0, %v707_v19, 0.0 }
  0xa5   : > { %712 = vadd.xlane.f32.xlu1 %v711_v20 }
 0x110   : > { %v710_v21 = vpop.xlane.xlu1 %709 }
 0x111   : > { %v714_v22 = vmul.f32 %v710_v21, %v701_v10 }
 0x113   : > { %v716_v23 = vadd.f32 1e-12, %v714_v22 }
 0x115   : > { %1893 = vrsqrt.f32 %v716_v23  ;;  %vm724_vm3 = vweird.f32 %v716_v23 }
 0x118   : > { %v713_v24 = vpop.xlane.xlu1 %712 }
 0x119   : > { %v715_v25 = vmul.f32 %v713_v24, %v701_v10 }
 0x11b   : > { %v1894_v26 = vpop.eup %1893  ;;  %v717_v27 = vadd.f32 1e-12, %v715_v25 }
 0x11c   : > { %v719_v28 = vmul.f32 %v1894_v26, %v716_v23  ;;  %vm725_vm2 = vweird.f32 %v1894_v26 }
 0x11d   : > { %1895 = vrsqrt.f32 %v717_v27  ;;  %vm726_vm4 = vmor %vm724_vm3, %vm725_vm2  ;;  %vm734_vm6 = vweird.f32 %v717_v27 }
 0x11e   : > { %v720_v29 = vmul.f32 %v1894_v26, %v719_v28 }
 0x120   : > { %v721_v30 = vmul.f32 0.5, %v720_v29 }
 0x122   : > { %v722_v31 = vsub.f32 1.5, %v721_v30 }
 0x123   : > { %v1896_v32 = vpop.eup %1895 }
 0x124   : > { %v723_v33 = vmul.f32 %v1894_v26, %v722_v31  ;;  %v729_v34 = vmul.f32 %v1896_v32, %v717_v27  ;;  %vm735_vm5 = vweird.f32 %v1896_v32 }
 0x125   : > { %vm736_vm7 = vmor %vm734_vm6, %vm735_vm5 }
 0x126   : > { %v727_v36 = vsel %vm726_vm4, %v1894_v26, %v723_v33  ;;  %v730_v37 = vmul.f32 %v1896_v32, %v729_v34 }
 0x127   : > { %v738_v39 = vmul.f32 %v727_v36, %v704_v13 }
 0x128   : > { %v731_v40 = vmul.f32 0.5, %v730_v37 }
 0x129   : > { %v743_v41 = vmul.f32 %v1889_v35, %v738_v39 }
 0x12a   : > { %v732_v42 = vsub.f32 1.5, %v731_v40 }
 0x12b   : > { %v748_v43 = vadd.f32 %v1890_v38, %v743_v41 }
 0x12c   : > { %v733_v44 = vmul.f32 %v1896_v32, %v732_v42 }
 0x12d   : > { %750 = vst.msk [vmem:[#allocation2] sm:$0xff] %vm688_vm0, %v748_v43 }
 0x12e   : > { %v737_v45 = vsel %vm736_vm7, %v1896_v32, %v733_v44 }
 0x12f   : > { %v739_v46 = vmul.f32 %v737_v45, %v705_v18 }
 0x131   : > { %v744_v47 = vmul.f32 %v1889_v35, %v739_v46 }
 0x133   : > { %v749_v48 = vadd.f32 %v1890_v38, %v744_v47 }
 0x135   : > { %751 = vst.msk [vmem:[#allocation2 + $0x8] sm:$0xff] %vm688_vm0, %v749_v48 }
 0x136 PF: > { %v1856_v49 = vld [vmem:[%s2105_s30 + $0x8] sm:$0xff]  ;;  %v1855_v50 = vld [vmem:[%s2105_s30] sm:$0xff]  ;;  %vm775_vm8 = vcmask 261120   ;;  %s2386_s29 = scalar_lea.vmem %s2357_s5, %s2095_s23  ;;  %s1987_s30 = smov 64   ;;  %vm806_vm9 = vcmask 64512   ;;  %vm1350_vm10 = vcmask 130048  }
 0x137   : > { %v2171_v51 = vld [vmem:[#allocation2] sm:$0xff]  ;;  %785 = vmatpush.bf16.msra.mxu0 %v1856_v49  ;;  %s1988_s0 = smov 96   ;;  %s1989_s17 = smov 88   ;;  %vm1353_vm11 = vcmask 195584   ;;  %vm1552_vm3 = vcmask 523264  }
 0x138   : > { %v1922_v54 = vld [vmem:[%s2386_s29] ss:$0 sm:$0xff]  ;;  %s1990_s18 = smov 120   ;;  %s1991_s19 = smov 72  }
 0x139   : > { %s1992_s22 = smov 80   ;;  %s1993_s27 = smov 112  }
 0x13a   : > { %s1994_s20 = smov 104   ;;  %s2387_s26 = sld [smem:[#allocation6_spill]] }
 0x13b   : > { %786 = vmatpush.bf16.msra.mxu0 %v1855_v50  ;;  %s2389_s16 = scalar_lea.vmem %s2359_s7, %s2095_s23  ;;  %s2390_s29 = scalar_lea.vmem %s2360_s8, %s2095_s23 }
 0x13c   : > { %v2173_v52 = vld [vmem:[#allocation2 + $0x8] sm:$0xff]  ;;  %s2393_s24 = sld [smem:[#allocation10_spill]] }
 0x13d   : > { %v754_v53 = vpack.c.bf16 %v2173_v52, %v2171_v51 }
 0x13f   : > { %1789 = vmatmul.msk.bf16.vlgmr.msra.gmra.mxu0 %vm775_vm8, %v754_v53 }
 0x140   : > { %v1923_v10 = vld [vmem:[%s2387_s26] ss:$0 sm:$0xff]  ;;  %v1924_v14 = vld [vmem:[%s2387_s26 + $0x1] ss:$0 sm:$0xff] }
 0x1bc   : > { %v788_v55 = vpop.f32.mrf.mxu0 }
 0x1bd   : > { %v2183_v56 = vadd.f32 %v1922_v54, %v788_v55 }
 0x1bf   : > { %882 = vrot.lane.b32.xlu2 %v2183_v56, %s1987_s30  ;;  %804 = vrot.lane.b32.xlu0 %v2183_v56, %s1988_s0  ;;  %v793_v60 = vmul.f32 0.35355338, %v2183_v56 }
 0x1c4   : > { %v790_v57 = vpop.f32.mrf.mxu0 }
 0x1c5   : > { %v2188_v58 = vadd.f32 %v1922_v54, %v790_v57 }
 0x1c7   : > { %833 = vrot.lane.b32.xlu1 %v2188_v58, %s1988_s0  ;;  %964 = vrot.lane.b32.xlu2 %v2188_v58, %s1989_s17  ;;  %v2193_v59 = vmul.f32 0.35355338, %v2188_v58  ;;  %s1995_s0 = smov 48  }
 0x1cf   : > { %962 = vrot.lane.b32.xlu2 %v2193_v59, %s1990_s18  ;;  %934 = vrot.lane.b32.xlu1 %v793_v60, %s1990_s18  ;;  %s1997_s18 = smov 56  }
 0x1d7   : > { %936 = vrot.lane.b32.xlu2 %v2183_v56, %s1989_s17  ;;  %1196 = vrot.lane.b32.xlu1 %v2183_v56, %s1991_s19  ;;  %s1996_s17 = smov 40  }
 0x1df   : > { %1066 = vrot.lane.b32.xlu2 %v2183_v56, %s1992_s22  ;;  %1094 = vrot.lane.b32.xlu1 %v2188_v58, %s1992_s22  ;;  %s1999_s22 = smov 16  }
 0x1e7   : > { %1064 = vrot.lane.b32.xlu2 %v793_v60, %s1993_s27 }
 0x1ef   : > { %1194 = vrot.lane.b32.xlu2 %v793_v60, %s1994_s20 }
 0x1f7   : > { %1224 = vrot.lane.b32.xlu2 %v2188_v58, %s1991_s19  ;;  %s1998_s19 = smov 8  }
 0x219   : > { %v883_v61 = vpop.permute.xlu2 %882 }
 0x221   : > { %v965_v62 = vpop.permute.xlu2 %964 }
 0x229   : > { %v963_v63 = vpop.permute.xlu2 %962 }
 0x231   : > { %v937_v0 = vpop.permute.xlu2 %936  ;;  %v805_v1 = vpop.permute.xlu0 %804 }
 0x232   : > { %1790 = vmatpush.xpose.msk.msra.mxu1 %vm806_vm9, %v805_v1 }
 0x235   : > { %1791 = vmatmul.msk.f32.vlgmr.msra.gmra.mxu1 %vm806_vm9, %v793_v60 }
 0x236   : > { %903 = vmatpush.msrb.mxu1 %v883_v61 }
 0x238   : > { %1796 = vmatpush.xpose.msk.msra.mxu1 %vm806_vm9, %v937_v0 }
 0x239   : > { %v834_v2 = vpop.permute.xlu1 %833  ;;  %v1067_v3 = vpop.permute.xlu2 %1066 }
 0x23a   : > { %1792 = vmatpush.xpose.msk.msra.mxu2 %vm806_vm9, %v834_v2  ;;  %v1902_v2 = vpack.i.bf16 %v2188_v58, %v2183_v56 }
 0x23d   : > { %1793 = vmatmul.msk.f32.vlgmr.msra.gmra.mxu2 %vm806_vm9, %v2193_v59 }
 0x23e   : > { %1798 = vmatpush.xpose.msk.msrb.mxu2 %vm806_vm9, %v965_v62 }
 0x241   : > { %v1065_v4 = vpop.permute.xlu2 %1064  ;;  %v935_v5 = vpop.permute.xlu1 %934 }
 0x242   : > { %1802 = vmatpush.xpose.msk.msra.mxu2 %vm806_vm9, %v1067_v3 }
 0x245   : > { %1799 = vmatmul.msk.f32.vlgmr.msrb.gmra.mxu2 %vm806_vm9, %v963_v63 }
 0x249   : > { %v1195_v6 = vpop.permute.xlu2 %1194  ;;  %v1197_v7 = vpop.permute.xlu1 %1196 }
 0x24a   : > { %1808 = vmatpush.xpose.msk.msrb.mxu2 %vm806_vm9, %v1197_v7 }
 0x24d   : > { %1803 = vmatmul.msk.f32.vlgmr.msra.gmra.mxu2 %vm806_vm9, %v1065_v4 }
 0x251   : > { %v1225_v8 = vpop.permute.xlu2 %1224  ;;  %v1095_v9 = vpop.permute.xlu1 %1094 }
 0x252   : > { %1804 = vmatpush.xpose.msk.msrb.mxu0 %vm806_vm9, %v1095_v9 }
 0x255   : > { %1809 = vmatmul.msk.f32.vlgmr.msrb.gmra.mxu2 %vm806_vm9, %v1195_v6 }
 0x256   : > { %1810 = vmatpush.xpose.msk.msra.mxu0 %vm806_vm9, %v1225_v8 }
 0x2b2   : > { %v829_v11 = vpop.f32.mrf.mxu1 }
 0x2b3   : > { %v830_v12 = vadd.f32 %v1923_v10, %v829_v11 }
 0x2b5   : > { %v860_v13 = vsel %vm806_vm9, %v830_v12, -inf }
 0x2b6   : > { %861 = vmax.xlane.f32.xlu0 %v860_v13 }
 0x2c0   : > { %v857_v15 = vpop.f32.mrf.mxu2 }
 0x2c1   : > { %v858_v16 = vadd.f32 %v1924_v14, %v857_v15 }
 0x2c3   : > { %v863_v17 = vsel %vm806_vm9, %v858_v16, -inf }
 0x2c4   : > { %864 = vmax.xlane.f32.xlu2 %v863_v17 }
 0x2c8   : > { %v987_v18 = vpop.f32.mrf.mxu2 }
 0x2c9   : > { %v988_v22 = vadd.f32 %v1924_v14, %v987_v18 }
 0x2ca   : > { %1092 = vrot.lane.b32.xlu0 %v2193_v59, %s1993_s27  ;;  %s2000_s27 = smov 24  }
 0x2cb   : > { %v993_v23 = vsel %vm806_vm9, %v988_v22, -inf }
 0x2d0   : > { %v1089_v19 = vpop.f32.mrf.mxu2 }
 0x2d1   : > { %v1090_v20 = vadd.f32 %v1923_v10, %v1089_v19 }
 0x2d3   : > { %v1120_v21 = vsel %vm806_vm9, %v1090_v20, -inf }
 0x2d4   : > { %1121 = vmax.xlane.f32.xlu2 %v1120_v21 }
 0x2d8   : > { %v1219_v24 = vpop.f32.mrf.mxu2 }
 0x2d9   : > { %v2230_v25 = vadd.f32 %v1923_v10, %v1219_v24 }
 0x2db   : > { %v1250_v26 = vsel %vm806_vm9, %v2230_v25, -inf }
 0x2f4   : > { %994 = vmax.xlane.f32.xlu0 %v993_v23 }
 0x2fc   : > { %1251 = vmax.xlane.f32.xlu0 %v1250_v26 }
 0x329   : > { %v862_v27 = vpop.xlane.xlu0 %861 }
 0x32a   : > { %v866_v28 = vsub.f32 %v830_v12, %v862_v27 }
 0x32c   : > { %v868_v29 = vmul.f32 1.442695, %v866_v28 }
 0x32e   : > { %1932 = vpow2.f32 %v868_v29 }
 0x334   : > { %v1933_v30 = vpop.eup %1932 }
 0x335   : > { %v872_v31 = vsel %vm806_vm9, %v1933_v30, 0.0 }
 0x336   : > { %873 = vadd.xlane.f32.xlu1 %v872_v31 }
 0x337   : > { %v865_v33 = vpop.xlane.xlu2 %864 }
 0x338   : > { %v867_v47 = vsub.f32 %v858_v16, %v865_v33 }
 0x33a   : > { %v870_v49 = vmul.f32 1.442695, %v867_v47 }
 0x33c   : > { %v1093_v32 = vpop.permute.xlu0 %1092 }
 0x33d   : > { %1805 = vmatmul.msk.f32.vlgmr.msrb.gmra.mxu0 %vm806_vm9, %v1093_v32 }
 0x347   : > { %v1122_v34 = vpop.xlane.xlu2 %1121 }
 0x348   : > { %v1126_v35 = vsub.f32 %v1090_v20, %v1122_v34 }
 0x34a   : > { %v1128_v36 = vmul.f32 1.442695, %v1126_v35 }
 0x34c   : > { %1934 = vpow2.f32 %v1128_v36 }
 0x34f   : > { %1222 = vrot.lane.b32.xlu1 %v2193_v59, %s1994_s20 }
 0x352   : > { %v2238_v37 = vpop.eup %1934 }
 0x353   : > { %v1132_v38 = vsel %vm806_vm9, %v2238_v37, 0.0 }
 0x354   : > { %1133 = vadd.xlane.f32.xlu0 %v1132_v38 }
 0x367   : > { %v995_v50 = vpop.xlane.xlu0 %994 }
 0x368   : > { %v997_v57 = vsub.f32 %v988_v22, %v995_v50 }
 0x36a   : > { %v1000_v61 = vmul.f32 1.442695, %v997_v57 }
 0x36f   : > { %v1252_v7 = vpop.xlane.xlu0 %1251 }
 0x370   : > { %v1256_v11 = vsub.f32 %v2230_v25, %v1252_v7 }
 0x3a9   : > { %v874_v39 = vpop.xlane.xlu1 %873 }
 0x3aa   : > { %1936 = vrcp.f32 %v874_v39 }
 0x3ab   : > { %1938 = vpow2.f32 %v870_v49 }
 0x3ac   : > { %1940 = vpow2.f32 %v1000_v61 }
 0x3b0   : > { %v1937_v40 = vpop.eup %1936 }
 0x3b1   : > { %v880_v41 = vmul.f32 %v1937_v40, %v1933_v30  ;;  %v1939_v62 = vpop.eup %1938 }
 0x3b2   : > { %v875_v63 = vsel %vm806_vm9, %v1939_v62, 0.0  ;;  %v1941_v0 = vpop.eup %1940 }
 0x3b3   : > { %1794 = vmatmul.msk.f32.vlgmr.msrb.gmra.mxu1 %vm806_vm9, %v880_v41  ;;  %v1005_v1 = vsel %vm806_vm9, %v1941_v0, 0.0 }
 0x3ba   : > { %v1117_v44 = vpop.f32.mrf.mxu0 }
 0x3bb   : > { %1797 = vmatmul.msk.f32.vlgmr.msra.gmra.mxu1 %vm806_vm9, %v935_v5  ;;  %v1118_v53 = vadd.f32 %v1924_v14, %v1117_v44 }
 0x3bd   : > { %v1123_v60 = vsel %vm806_vm9, %v1118_v53, -inf }
 0x3c1   : > { %v1223_v42 = vpop.permute.xlu1 %1222 }
 0x3c2   : > { %1811 = vmatmul.msk.f32.vlgmr.msra.gmra.mxu0 %vm806_vm9, %v1223_v42 }
 0x3c7   : > { %v1134_v35 = vpop.xlane.xlu0 %1133 }
 0x430   : > { %v2245_v43 = vpop.f32.mrf.mxu1 }
 0x438   : > { %v959_v45 = vpop.f32.mrf.mxu1 }
 0x439   : > { %v960_v46 = vadd.f32 %v1923_v10, %v959_v45 }
 0x43b   : > { %v990_v48 = vsel %vm806_vm9, %v960_v46, -inf }
 0x43c   : > { %991 = vmax.xlane.f32.xlu1 %v990_v48 }
 0x43f   : > { %v1247_v54 = vpop.f32.mrf.mxu0 }
 0x440   : > { %v1248_v55 = vadd.f32 %v1924_v14, %v1247_v54 }
 0x442   : > { %v1253_v59 = vsel %vm806_vm9, %v1248_v55, -inf }
 0x443   : > { %1254 = vmax.xlane.f32.xlu2 %v1253_v59 }
 0x444   : > { %1124 = vmax.xlane.f32.xlu1 %v1123_v60 }
 0x44c   : > { %876 = vadd.xlane.f32.xlu1 %v875_v63 }
 0x454   : > { %1006 = vadd.xlane.f32.xlu1 %v1005_v1 }
 0x45b   : > { %908 = vrot.lane.b32.xlu2 %v2188_v58, %s1987_s30  ;;  %s2388_s30 = sld [smem:[#allocation4_spill]] }
 0x463   : > { %1903 = vrot.lane.b32.xlu2 %v1902_v2, %s1995_s0 }
 0x46b   : > { %1272 = vrot.lane.b32.xlu2 %v2183_v56, %s1996_s17  ;;  %v1258_v56 = vmul.f32 1.442695, %v1256_v11 }
 0x46d   : > { %1898 = vrot.lane.b32.xlu1 %v1902_v2, %s1997_s18  ;;  %v1858_v2 = vld [vmem:[%s2388_s30 + $0x8] sm:$0xff]  ;;  %s2391_s18 = scalar_lea.vmem %s2361_s9, %s2095_s23 }
 0x46e   : > { %1386 = vmatpush.bf16.msra.mxu2 %v1858_v2  ;;  %v1926_v2 = vld [vmem:[%s2390_s29] ss:$0 sm:$0xff] }
 0x475   : > { %1298 = vrot.lane.b32.xlu1 %v2188_v58, %s1996_s17 }
 0x4af   : > { %v992_v3 = vpop.xlane.xlu1 %991 }
 0x4b0   : > { %v996_v4 = vsub.f32 %v960_v46, %v992_v3  ;;  %v1857_v3 = vld [vmem:[%s2388_s30] sm:$0xff] }
 0x4b1   : > { %1387 = vmatpush.bf16.msra.mxu2 %v1857_v3 }
 0x4b2   : > { %v998_v5 = vmul.f32 1.442695, %v996_v4 }
 0x4b4   : > { %1942 = vpow2.f32 %v998_v5 }
 0x4b6   : > { %v1255_v6 = vpop.xlane.xlu2 %1254 }
 0x4b7   : > { %v1125_v8 = vpop.xlane.xlu1 %1124  ;;  %v1257_v16 = vsub.f32 %v1248_v55, %v1255_v6 }
 0x4b8   : > { %v1127_v9 = vsub.f32 %v1118_v53, %v1125_v8 }
 0x4b9   : > { %v1260_v19 = vmul.f32 1.442695, %v1257_v16 }
 0x4ba   : > { %v1943_v10 = vpop.eup %1942  ;;  %v1130_v12 = vmul.f32 1.442695, %v1127_v9 }
 0x4bb   : > { %v1002_v13 = vsel %vm806_vm9, %v1943_v10, 0.0 }
 0x4bc   : > { %1944 = vpow2.f32 %v1130_v12  ;;  %1003 = vadd.xlane.f32.xlu0 %v1002_v13 }
 0x4be   : > { %v909_v14 = vpop.permute.xlu2 %908 }
 0x4bf   : > { %929 = vmatpush.msra.mxu3 %v909_v14  ;;  %v877_v58 = vpop.xlane.xlu1 %876 }
 0x4c0   : > { %1946 = vrcp.f32 %v877_v58 }
 0x4c1   : > { %1948 = vpow2.f32 %v1258_v56 }
 0x4c2   : > { %v1945_v15 = vpop.eup %1944  ;;  %1950 = vpow2.f32 %v1260_v19 }
 0x4c3   : > { %v1135_v17 = vsel %vm806_vm9, %v1945_v15, 0.0 }
 0x4c4   : > { %1136 = vadd.xlane.f32.xlu0 %v1135_v17 }
 0x4c6   : > { %v1947_v18 = vpop.eup %1946  ;;  %v1904_v27 = vpop.permute.xlu2 %1903 }
 0x4c7   : > { %v881_v20 = vmul.f32 %v1947_v18, %v1939_v62  ;;  %v1949_v21 = vpop.eup %1948  ;;  %v1007_v25 = vpop.xlane.xlu1 %1006  ;;  %v1905_v31 = vunpack.i.l.bf16 %v1904_v27  ;;  %v1906_v33 = vunpack.i.h.bf16 %v1904_v27  ;;  %v1925_v18 = vld [vmem:[%s2389_s16] ss:$0 sm:$0xff] }
 0x4c8   : > { %v1262_v22 = vsel %vm806_vm9, %v1949_v21, 0.0  ;;  %v1951_v23 = vpop.eup %1950  ;;  %1952 = vrcp.f32 %v1007_v25 }
 0x4c9   : > { %1795 = vmatmul.msk.f32.vlgmr.msra.gmra.mxu3 %vm806_vm9, %v881_v20  ;;  %v1265_v24 = vsel %vm806_vm9, %v1951_v23, 0.0 }
 0x4cc   : > { %1263 = vadd.xlane.f32.xlu0 %v1262_v22 }
 0x4ce   : > { %v1953_v26 = vpop.eup %1952  ;;  %v1273_v41 = vpop.permute.xlu2 %1272 }
 0x4cf   : > { %v1011_v32 = vmul.f32 %v1953_v26, %v1941_v0  ;;  %v2001_v26 = vmov 32.0  }
 0x4d4   : > { %1266 = vadd.xlane.f32.xlu0 %v1265_v24 }
 0x4df   : > { %v1899_v28 = vpop.permute.xlu1 %1898 }
 0x4e0   : > { %v1901_v29 = vunpack.i.h.bf16 %v1899_v28  ;;  %v1900_v30 = vunpack.i.l.bf16 %v1899_v28 }
 0x4e2   : > { %1033 = vmatpush.msrb.mxu3 %v1900_v30  ;;  %1059 = vmatpush.msrb.mxu1 %v1901_v29 }
 0x4e3   : > { %1801 = vmatmul.msk.f32.vlgmr.msrb.gmra.mxu1 %vm806_vm9, %v1011_v32 }
 0x4e4   : > { %1163 = vmatpush.msra.mxu3 %v1905_v31  ;;  %1189 = vmatpush.msra.mxu1 %v1906_v33 }
 0x4e7   : > { %v1299_v34 = vpop.permute.xlu1 %1298 }
 0x4e8   : > { %1319 = vmatpush.msrb.mxu1 %v1299_v34 }
 0x52f   : > { %v1004_v36 = vpop.xlane.xlu0 %1003 }
 0x530   : > { %1954 = vrcp.f32 %v1004_v36 }
 0x531   : > { %1956 = vrcp.f32 %v1134_v35 }
 0x536   : > { %v1955_v38 = vpop.eup %1954 }
 0x537   : > { %v1137_v39 = vpop.xlane.xlu0 %1136  ;;  %v1010_v40 = vmul.f32 %v1955_v38, %v1943_v10  ;;  %v1957_v42 = vpop.eup %1956 }
 0x538   : > { %1958 = vrcp.f32 %v1137_v39  ;;  %v1140_v45 = vmul.f32 %v1957_v42, %v2238_v37  ;;  %v1860_v42 = vld [vmem:[%s2127_s4 + $0x8] sm:$0xff] }
 0x539   : > { %1800 = vmatmul.msk.f32.vlgmr.msrb.gmra.mxu3 %vm806_vm9, %v1010_v40  ;;  %1489 = vmatpush.bf16.msrb.mxu0 %v1860_v42 }
 0x53a   : > { %1293 = vmatpush.msrb.mxu3 %v1273_v41 }
 0x53e   : > { %v1959_v44 = vpop.eup %1958 }
 0x53f   : > { %v1141_v46 = vmul.f32 %v1959_v44, %v1945_v15  ;;  %v1264_v47 = vpop.xlane.xlu0 %1263 }
 0x540   : > { %1960 = vrcp.f32 %v1264_v47  ;;  %v1859_v47 = vld [vmem:[%s2127_s4] sm:$0xff] }
 0x541   : > { %1806 = vmatmul.msk.f32.vlgmr.msra.gmra.mxu3 %vm806_vm9, %v1140_v45  ;;  %1807 = vmatmul.msk.f32.vlgmr.msra.gmra.mxu1 %vm806_vm9, %v1141_v46 }
 0x542   : > { %1490 = vmatpush.bf16.msrb.mxu0 %v1859_v47 }
 0x546   : > { %v1961_v48 = vpop.eup %1960 }
 0x547   : > { %v1270_v49 = vmul.f32 %v1961_v48, %v1949_v21  ;;  %v1267_v50 = vpop.xlane.xlu0 %1266 }
 0x548   : > { %1962 = vrcp.f32 %v1267_v50 }
 0x549   : > { %1812 = vmatmul.msk.f32.vlgmr.msrb.gmra.mxu3 %vm806_vm9, %v1270_v49  ;;  %1964 = vrcp.f32 %v2001_v26 }
 0x54c   : > { %v931_v55 = vpop.f32.mrf.mxu3 }
 0x54e   : > { %v1963_v53 = vpop.eup %1962 }
 0x54f   : > { %v1271_v54 = vmul.f32 %v1963_v53, %v1951_v23  ;;  %v1965_v27 = vpop.eup %1964 }
 0x550   : > { %v1405_v28 = vmul.f32 32.0, %v1965_v27  ;;  %vm1409_vm12 = vweird.f32 %v1965_v27 }
 0x551   : > { %1813 = vmatmul.msk.f32.vlgmr.msrb.gmra.mxu1 %vm806_vm9, %v1271_v54 }
 0x552   : > { %v1406_v29 = vsub.f32 1.0, %v1405_v28 }
 0x554   : > { %v1407_v30 = vmul.f32 %v1965_v27, %v1406_v29 }
 0x556   : > { %v1408_v31 = vadd.f32 %v1965_v27, %v1407_v30 }
 0x560   : > { %v1061_v37 = vpop.f32.mrf.mxu1 }
 0x5bc   : > { %v1035_v57 = vpop.f32.mrf.mxu3 }
 0x5bd   : > { %v1907_v59 = vpack.i.bf16 %v1061_v37, %v1035_v57 }
 0x5be   : > { %v1191_v60 = vpop.f32.mrf.mxu1 }
 0x5bf   : > { %1908 = vrot.lane.b32.xlu0 %v1907_v59, %s1998_s19 }
 0x5c4   : > { %v1165_v61 = vpop.f32.mrf.mxu3 }
 0x5c5   : > { %v1912_v62 = vpack.i.bf16 %v1191_v60, %v1165_v61 }
 0x5c7   : > { %1913 = vrot.lane.b32.xlu2 %v1912_v62, %s1999_s22  ;;  %s2392_s22 = scalar_lea.vmem %s2363_s11, %s2095_s23 }
 0x5cc   : > { %v1295_v63 = vpop.f32.mrf.mxu3 }
 0x5ce   : > { %v1321_v0 = vpop.f32.mrf.mxu1 }
 0x5cf   : > { %v1917_v1 = vpack.i.bf16 %v1321_v0, %v1295_v63 }
 0x5d1   : > { %1918 = vrot.lane.b32.xlu1 %v1917_v1, %s2000_s27 }
 0x621   : > { %v1914_v7 = vpop.permute.xlu2 %1913 }
 0x622   : > { %v1916_v10 = vunpack.i.h.bf16 %v1914_v7  ;;  %v1915_v11 = vunpack.i.l.bf16 %v1914_v7 }
 0x631   : > { %v1909_v4 = vpop.permute.xlu0 %1908 }
 0x632   : > { %v1911_v5 = vunpack.i.h.bf16 %v1909_v4  ;;  %v1910_v6 = vunpack.i.l.bf16 %v1909_v4 }
 0x634   : > { %v1349_v8 = vsel %vm806_vm9, %v931_v55, %v1911_v5  ;;  %v1348_v9 = vsel %vm806_vm9, %v2245_v43, %v1910_v6  ;;  %v1927_v6 = vld [vmem:[%s2391_s18] ss:$0 sm:$0xff] }
 0x635   : > { %v1351_v14 = vsel %vm1350_vm10, %v1348_v9, %v1915_v11  ;;  %v1352_v58 = vsel %vm1350_vm10, %v1349_v8, %v1916_v10 }
 0x643   : > { %v1919_v12 = vpop.permute.xlu1 %1918 }
 0x644   : > { %v1921_v13 = vunpack.i.h.bf16 %v1919_v12  ;;  %v1920_v56 = vunpack.i.l.bf16 %v1919_v12 }
 0x646   : > { %v1354_v15 = vsel %vm1353_vm11, %v1351_v14, %v1920_v56  ;;  %v1355_v16 = vsel %vm1353_vm11, %v1352_v58, %v1921_v13  ;;  %v1864_v13 = vld [vmem:[%s2137_s21 + $0x18] sm:$0xff]  ;;  %v1863_v56 = vld [vmem:[%s2137_s21 + $0x10] sm:$0xff]  ;;  %v1862_v14 = vld [vmem:[%s2137_s21 + $0x8] sm:$0xff] }
 0x647   : > { %v1356_v17 = vpack.c.bf16 %v1355_v16, %v1354_v15  ;;  %1560 = vmatpush.bf16.msra.mxu3 %v1864_v13  ;;  %v1928_v58 = vld [vmem:[%s2392_s22] ss:$0 sm:$0xff] }
 0x648   : > { %v1861_v16 = vld [vmem:[%s2137_s21] sm:$0xff] }
 0x649   : > { %1822 = vmatmul.msk.bf16.vlgmr.msra.gmra.mxu2 %vm775_vm8, %v1356_v17  ;;  %v1931_v13 = vld [vmem:[%s678_s3] ss:$0 sm:$0xff] }
 0x64b   : > { %1561 = vmatpush.bf16.msra.mxu3 %v1863_v56 }
 0x64f   : > { %1562 = vmatpush.bf16.msra.mxu3 %v1862_v14 }
 0x653   : > { %1563 = vmatpush.bf16.msra.mxu3 %v1861_v16 }
 0x6cc   : > { %v1389_v43 = vpop.f32.mrf.mxu2 }
 0x6cd   : > { %v1390_v19 = vadd.f32 %v1925_v18, %v1389_v43 }
 0x6cf   : > { %v1394_v20 = vadd.f32 %v1390_v19, %v2171_v51  ;;  %v2286_v51 = vsel %vm1409_vm12, %v1965_v27, %v1408_v31 }
 0x6d1   : > { %v1398_v21 = vsel %vm775_vm8, %v1394_v20, 0.0 }
 0x6d2   : > { %1399 = vadd.xlane.f32.xlu2 %v1398_v21 }
 0x6d4   : > { %v1391_v22 = vpop.f32.mrf.mxu2 }
 0x6d5   : > { %v1392_v23 = vadd.f32 %v1925_v18, %v1391_v22 }
 0x6d7   : > { %v1395_v24 = vadd.f32 %v1392_v23, %v2173_v52 }
 0x6d9   : > { %v1401_v25 = vsel %vm775_vm8, %v1395_v24, 0.0 }
 0x6da   : > { %1402 = vadd.xlane.f32.xlu1 %v1401_v25 }
 0x745   : > { %v1400_v32 = vpop.xlane.xlu2 %1399 }
 0x746   : > { %v1411_v33 = vmul.f32 %v2286_v51, %v1400_v32 }
 0x748   : > { %v1413_v34 = vsub.f32 %v1394_v20, %v1411_v33 }
 0x74a   : > { %v1415_v52 = vmul.f32 %v1413_v34, %v1413_v34 }
 0x74c   : > { %v1417_v35 = vsel %vm775_vm8, %v1415_v52, 0.0 }
 0x74d   : > { %v1403_v36 = vpop.xlane.xlu1 %1402  ;;  %1418 = vadd.xlane.f32.xlu0 %v1417_v35 }
 0x74e   : > { %v1412_v38 = vmul.f32 %v2286_v51, %v1403_v36 }
 0x750   : > { %v1414_v39 = vsub.f32 %v1395_v24, %v1412_v38  ;;  %v1929_v38 = vld [vmem:[%s672_s25] ss:$0 sm:$0xff] }
 0x752   : > { %v1416_v40 = vmul.f32 %v1414_v39, %v1414_v39 }
 0x754   : > { %v1420_v41 = vsel %vm775_vm8, %v1416_v40, 0.0 }
 0x755   : > { %1421 = vadd.xlane.f32.xlu2 %v1420_v41 }
 0x7c0   : > { %v1419_v44 = vpop.xlane.xlu0 %1418 }
 0x7c1   : > { %v1423_v45 = vmul.f32 %v1419_v44, %v2286_v51 }
 0x7c3   : > { %v1425_v46 = vadd.f32 1e-12, %v1423_v45 }
 0x7c5   : > { %1966 = vrsqrt.f32 %v1425_v46  ;;  %vm1433_vm14 = vweird.f32 %v1425_v46 }
 0x7c8   : > { %v1422_v48 = vpop.xlane.xlu2 %1421 }
 0x7c9   : > { %v1424_v49 = vmul.f32 %v1422_v48, %v2286_v51 }
 0x7cb   : > { %v1967_v50 = vpop.eup %1966  ;;  %v1426_v53 = vadd.f32 1e-12, %v1424_v49 }
 0x7cc   : > { %v1428_v54 = vmul.f32 %v1967_v50, %v1425_v46  ;;  %vm1434_vm13 = vweird.f32 %v1967_v50 }
 0x7cd   : > { %1968 = vrsqrt.f32 %v1426_v53  ;;  %vm1435_vm15 = vmor %vm1433_vm14, %vm1434_vm13  ;;  %vm1443_vm1 = vweird.f32 %v1426_v53 }
 0x7ce   : > { %v1429_v55 = vmul.f32 %v1967_v50, %v1428_v54 }
 0x7d0   : > { %v1430_v37 = vmul.f32 0.5, %v1429_v55 }
 0x7d2   : > { %v1431_v57 = vsub.f32 1.5, %v1430_v37 }
 0x7d3   : > { %v1969_v59 = vpop.eup %1968 }
 0x7d4   : > { %v1432_v60 = vmul.f32 %v1967_v50, %v1431_v57  ;;  %v1438_v61 = vmul.f32 %v1969_v59, %v1426_v53  ;;  %vm1444_vm0 = vweird.f32 %v1969_v59 }
 0x7d5   : > { %vm1445_vm2 = vmor %vm1443_vm1, %vm1444_vm0 }
 0x7d6   : > { %v1439_v62 = vmul.f32 %v1969_v59, %v1438_v61  ;;  %v1436_v63 = vsel %vm1435_vm15, %v1967_v50, %v1432_v60 }
 0x7d7   : > { %v1447_v3 = vmul.f32 %v1436_v63, %v1413_v34 }
 0x7d8   : > { %v1440_v0 = vmul.f32 0.5, %v1439_v62 }
 0x7d9   : > { %v1452_v7 = vmul.f32 %v1926_v2, %v1447_v3 }
 0x7da   : > { %v1441_v1 = vsub.f32 1.5, %v1440_v0 }
 0x7db   : > { %v1457_v10 = vadd.f32 %v1927_v6, %v1452_v7 }
 0x7dc   : > { %v1442_v4 = vmul.f32 %v1969_v59, %v1441_v1 }
 0x7de   : > { %v1446_v5 = vsel %vm1445_vm2, %v1969_v59, %v1442_v4 }
 0x7df   : > { %v1448_v8 = vmul.f32 %v1446_v5, %v1414_v39 }
 0x7e1   : > { %v1453_v9 = vmul.f32 %v1926_v2, %v1448_v8 }
 0x7e3   : > { %v1458_v11 = vadd.f32 %v1927_v6, %v1453_v9 }
 0x7e5   : > { %v1459_v12 = vpack.c.bf16 %v1458_v11, %v1457_v10 }
 0x7e7   : > { %1831 = vmatmul.msk.bf16.vlgmr.msrb.gmra.mxu0 %vm775_vm8, %v1459_v12 }
 0x864   : > { %v1492_v15 = vpop.f32.mrf.mxu0 }
 0x865   : > { %v1493_v17 = vadd.f32 %v1928_v58, %v1492_v15 }
 0x867   : > { %v1497_v18 = vmul.f32 %v1493_v17, %v1493_v17 }
 0x869   : > { %v1499_v43 = vmul.f32 %v1497_v18, %v1493_v17 }
 0x86b   : > { %v1501_v19 = vmul.f32 0.044715, %v1499_v43 }
 0x86c   : > { %v1494_v20 = vpop.f32.mrf.mxu0 }
 0x86d   : > { %v1503_v21 = vadd.f32 %v1501_v19, %v1493_v17  ;;  %v1495_v22 = vadd.f32 %v1928_v58, %v1494_v20 }
 0x86f   : > { %v1505_v23 = vmul.f32 0.7978846, %v1503_v21  ;;  %v1498_v24 = vmul.f32 %v1495_v22, %v1495_v22 }
 0x871   : > { %v1500_v25 = vmul.f32 %v1498_v24, %v1495_v22  ;;  %1970 = vtanh.f32 %v1505_v23 }
 0x873   : > { %v1502_v26 = vmul.f32 0.044715, %v1500_v25 }
 0x875   : > { %v1504_v27 = vadd.f32 %v1502_v26, %v1495_v22 }
 0x877   : > { %v1506_v28 = vmul.f32 0.7978846, %v1504_v27  ;;  %v1971_v29 = vpop.eup %1970 }
 0x878   : > { %v1509_v30 = vadd.f32 1.0, %v1971_v29 }
 0x879   : > { %1972 = vtanh.f32 %v1506_v28 }
 0x87a   : > { %v1511_v32 = vmul.f32 0.5, %v1509_v30 }
 0x87c   : > { %v1513_v52 = vmul.f32 %v1511_v32, %v1493_v17 }
 0x87f   : > { %v1973_v31 = vpop.eup %1972 }
 0x880   : > { %v1510_v33 = vadd.f32 1.0, %v1973_v31 }
 0x882   : > { %v1512_v34 = vmul.f32 0.5, %v1510_v33 }
 0x884   : > { %v1514_v35 = vmul.f32 %v1512_v34, %v1495_v22 }
 0x886   : > { %v1515_v36 = vpack.c.bf16 %v1514_v35, %v1513_v52 }
 0x888   : > { %1848 = vmatmul.msk.bf16.vlgmr.msra.gmra.mxu3 %vm1552_vm3, %v1515_v36 }
 0x90b   : > { %v1565_v39 = vpop.f32.mrf.mxu3 }
 0x90c   : > { %v1566_v40 = vadd.f32 %v1929_v38, %v1565_v39 }
 0x90e   : > { %v1570_v41 = vadd.f32 %v1566_v40, %v1457_v10 }
 0x910   : > { %v1574_v42 = vsel %vm775_vm8, %v1570_v41, 0.0 }
 0x911   : > { %1575 = vadd.xlane.f32.xlu1 %v1574_v42 }
 0x913   : > { %v1567_v44 = vpop.f32.mrf.mxu3 }
 0x914   : > { %v1568_v45 = vadd.f32 %v1929_v38, %v1567_v44 }
 0x916   : > { %v1571_v46 = vadd.f32 %v1568_v45, %v1458_v11  ;;  %v1930_v11 = vld [vmem:[%s675_s28] ss:$0 sm:$0xff] }
 0x918   : > { %v1577_v47 = vsel %vm775_vm8, %v1571_v46, 0.0 }
 0x919   : > { %1578 = vadd.xlane.f32.xlu2 %v1577_v47 }
 0x984   : > { %v1576_v48 = vpop.xlane.xlu1 %1575 }
 0x985   : > { %v1580_v49 = vmul.f32 %v1576_v48, %v2286_v51 }
 0x987   : > { %v1582_v50 = vsub.f32 %v1570_v41, %v1580_v49 }
 0x989   : > { %v1584_v53 = vmul.f32 %v1582_v50, %v1582_v50 }
 0x98b   : > { %v1586_v54 = vsel %vm775_vm8, %v1584_v53, 0.0 }
 0x98c   : > { %v1579_v55 = vpop.xlane.xlu2 %1578  ;;  %1587 = vadd.xlane.f32.xlu0 %v1586_v54 }
 0x98d   : > { %v1581_v37 = vmul.f32 %v1579_v55, %v2286_v51 }
 0x98f   : > { %v1583_v57 = vsub.f32 %v1571_v46, %v1581_v37 }
 0x991   : > { %v1585_v59 = vmul.f32 %v1583_v57, %v1583_v57 }
 0x993   : > { %v1589_v60 = vsel %vm775_vm8, %v1585_v59, 0.0 }
 0x994   : > { %1590 = vadd.xlane.f32.xlu1 %v1589_v60 }
 0x9ff   : > { %v1588_v61 = vpop.xlane.xlu0 %1587 }
 0xa00   : > { %v1592_v62 = vmul.f32 %v1588_v61, %v2286_v51 }
 0xa02   : > { %v1594_v63 = vadd.f32 1e-12, %v1592_v62 }
 0xa04   : > { %1974 = vrsqrt.f32 %v1594_v63  ;;  %vm1602_vm5 = vweird.f32 %v1594_v63 }
 0xa07   : > { %v1591_v0 = vpop.xlane.xlu1 %1590 }
 0xa08   : > { %v1593_v1 = vmul.f32 %v1591_v0, %v2286_v51 }
 0xa0a   : > { %v1975_v2 = vpop.eup %1974  ;;  %v1595_v3 = vadd.f32 1e-12, %v1593_v1 }
 0xa0b   : > { %v1597_v4 = vmul.f32 %v1975_v2, %v1594_v63  ;;  %vm1603_vm4 = vweird.f32 %v1975_v2 }
 0xa0c   : > { %1976 = vrsqrt.f32 %v1595_v3  ;;  %vm1604_vm6 = vmor %vm1602_vm5, %vm1603_vm4  ;;  %vm1612_vm9 = vweird.f32 %v1595_v3 }
 0xa0d   : > { %v1598_v5 = vmul.f32 %v1975_v2, %v1597_v4 }
 0xa0f   : > { %v1599_v6 = vmul.f32 0.5, %v1598_v5 }
 0xa11   : > { %v1600_v7 = vsub.f32 1.5, %v1599_v6 }
 0xa12   : > { %v1977_v8 = vpop.eup %1976 }
 0xa13   : > { %v1601_v9 = vmul.f32 %v1975_v2, %v1600_v7  ;;  %v1607_v10 = vmul.f32 %v1977_v8, %v1595_v3  ;;  %vm1613_vm7 = vweird.f32 %v1977_v8 }
 0xa14   : > { %vm1614_vm10 = vmor %vm1612_vm9, %vm1613_vm7 }
 0xa15   : > { %v1605_v51 = vsel %vm1604_vm6, %v1975_v2, %v1601_v9  ;;  %v1608_v12 = vmul.f32 %v1977_v8, %v1607_v10 }
 0xa16   : > { %v1616_v56 = vmul.f32 %v1605_v51, %v1582_v50 }
 0xa17   : > { %v1609_v14 = vmul.f32 0.5, %v1608_v12 }
 0xa18   : > { %v1621_v58 = vmul.f32 %v1930_v11, %v1616_v56 }
 0xa19   : > { %v1610_v15 = vsub.f32 1.5, %v1609_v14 }
 0xa1a   : > { %v1626_v16 = vadd.f32 %v1931_v13, %v1621_v58 }
 0xa1b   : > { %v1611_v17 = vmul.f32 %v1977_v8, %v1610_v15 }
 0xa1c   : > { %1628 = vst.msk [vmem:[#allocation2] sm:$0xff] %vm775_vm8, %v1626_v16 }
 0xa1d   : > { %1630 = vst.msk [vmem:[%s2393_s24] sm:$0xff] %vm775_vm8, %v1626_v16  ;;  %v1615_v18 = vsel %vm1614_vm10, %v1977_v8, %v1611_v17 }
 0xa1e   : > { %v1617_v43 = vmul.f32 %v1615_v18, %v1583_v57 }
 0xa20   : > { %v1622_v19 = vmul.f32 %v1930_v11, %v1617_v43 }
 0xa22   : > { %v1627_v20 = vadd.f32 %v1931_v13, %v1622_v19 }
 0xa24   : > { %1629 = vst.msk [vmem:[#allocation2 + $0x8] sm:$0xff] %vm775_vm8, %v1627_v20 }
 0xa25   : > { %1631 = vst.msk [vmem:[%s2393_s24 + $0x8] sm:$0xff] %vm775_vm8, %v1627_v20 }
 0xa26 PF: > { %s2394_s29 = sld [smem:[#allocation3_spill]] }
 0xa2c   : > { %s26_s21 = sadd.s32 1, %s2394_s29  }
 0xa2d   : > { %p23_p5 = scmp.ge.s32.totalorder %s26_s21, 4  }
 0xa2f   :  { %25 = sbr.rel (!%p23_p5) target bundleno = 7 (0x7), region = 147 }

</bundles_post_ra>
